<compile_context>
chip_gen: v5e
topology: v5e:2x2
jax: 0.10.0
libtpu: 0.0.40
codegen_flags: <defaults>
</compile_context>

<pallas_src>
import functools

import jax
import jax.numpy as jnp
import numpy as np
from jax.experimental import pallas as pl
from jax.experimental.pallas import tpu as pltpu

SELU_ALPHA = 1.6732632423543772848170429916717
SELU_SCALE = 1.0507009873554804934193349852946
_NEG_BIG = -1e30

_VMEM = pl.BlockSpec(memory_space=pltpu.MemorySpace.VMEM)


def _selu(x):
    return SELU_SCALE * jnp.where(x > 0, x, SELU_ALPHA * (jnp.exp(x) - 1.0))


def _round_up(x, m):
    return (x + m - 1) // m * m


def _device_kind():
    try:
        return jax.devices()[0].device_kind.lower()
    except Exception:
        return ""


def _vmem_limit_bytes():
    # Generation-aware VMEM budget: half of physical, capped at 64 MiB.
    # (v5e/v6e: 128 MiB physical -> 64 MiB; v7x: 64 MiB physical -> 32 MiB.)
    try:
        cap = int(pltpu.get_tpu_info().vmem_capacity_bytes)
    except Exception:
        cap = 128 * 1024 * 1024
    return max(16 * 1024 * 1024, min(64 * 1024 * 1024, cap // 2))


# --------------------------------------------------------------------------
# knn-average + linear kernel (own pallas_call, fully tiled over rows & K):
#   h_knn = ((knn/deg) @ self_emb) @ Wk^T + bk
# knn is pre-row-normalized on the host, so no in-kernel degree reduce.
# --------------------------------------------------------------------------
def knn_avg_kernel(knn_ref, self_ref, wk_ref, bk_ref, out_ref, acc_sc):
    k = pl.program_id(1)

    @pl.when(k == 0)
    def _init():
        acc_sc[...] = jnp.zeros_like(acc_sc)

    acc_sc[...] += jnp.dot(knn_ref[...], self_ref[...],
                           preferred_element_type=jnp.float32)

    @pl.when(k == pl.num_programs(1) - 1)
    def _finalize():
        out_ref[...] = jnp.dot(acc_sc[...], wk_ref[...],
                               preferred_element_type=jnp.float32) + bk_ref[...]


# --------------------------------------------------------------------------
# Fused node-update kernel (one node type per call):
#   attention scores (relu-MLP, key projection precomputed) -> online softmax
#   over the "other" axis -> aggregate -> GCN linear -> + precomputed knn
#   linear -> SELU.  Grid = (self-row tiles [parallel], other tiles [arbitrary])
# --------------------------------------------------------------------------
def make_fused_kernel(n_other, tk, pad_cols):
    def kernel(self_row_ref, kproj_t_ref, other_ref, adj_ref, hknn_ref,
               w1q_ref, b1_ref, w2_ref, b2_ref, wg_ref, bg_ref,
               out_ref, qs_sc, m_sc, l_sc, acc_sc):
        j = pl.program_id(1)
        nj = pl.num_programs(1)

        @pl.when(j == 0)
        def _init():
            # query projection depends only on the row tile -> compute once
            qs_sc[...] = jnp.dot(self_row_ref[...], w1q_ref[...],
                                 preferred_element_type=jnp.float32) + b1_ref[...]
            m_sc[...] = jnp.full_like(m_sc, _NEG_BIG)
            l_sc[...] = jnp.zeros_like(l_sc)
            acc_sc[...] = jnp.zeros_like(acc_sc)

        qs = qs_sc[...]                                   # (TM, A) f32
        kt = kproj_t_ref[...]                             # (A, TK) f32 (precomputed)
        tm = qs.shape[0]
        n_att = qs.shape[1]

        # attention logits, lane-dense (TM, TK); unrolled A loop, no 3-D temp.
        # TODO(synk): switch to lax.fori_loop(..., unroll=True) if atten_dim > ~16.
        s = jnp.zeros((tm, tk), jnp.float32)
        for a in range(n_att):
            s = s + jnp.maximum(qs[:, a:a + 1] + kt[a:a + 1, :], 0.0) * w2_ref[:, a:a + 1]
        alpha = jnp.maximum(s + b2_ref[...], 0.0)
        # zero-adjacency entries stay at logit 0 (matches torch semantics)
        alpha = alpha * adj_ref[...].astype(jnp.float32)
        if pad_cols:
            col = j * tk + jax.lax.broadcasted_iota(jnp.int32, (tm, tk), 1)
            alpha = jnp.where(col < n_other, alpha, _NEG_BIG)

        # online softmax over the "other" axis (flash pattern)
        m_tile = jnp.max(alpha, axis=-1, keepdims=True)
        m_new = jnp.maximum(m_sc[...], m_tile)
        corr = jnp.exp(m_sc[...] - m_new)
        p = jnp.exp(alpha - m_new)
        l_sc[...] = corr * l_sc[...] + jnp.sum(p, axis=-1, keepdims=True)
        acc_sc[...] = corr * acc_sc[...] + jnp.dot(
            p.astype(other_ref.dtype), other_ref[...],
            preferred_element_type=jnp.float32)
        m_sc[...] = m_new

        # finalize: GCN linear + precomputed knn linear + SELU
        @pl.when(j == nj - 1)
        def _finalize():
            e_r = acc_sc[...] * pl.reciprocal(l_sc[...], approx=True)   # (TM, Do)
            h_gcn = jnp.dot(e_r, wg_ref[...],
                            preferred_element_type=jnp.float32) + bg_ref[...]
            out_ref[...] = _selu(h_gcn + hknn_ref[...])
    return kernel


def fused_node_update(self_emb, other_emb, adj, knn_norm, kp):
    """Attention-GCN + knn-average + SELU for one node type.

    kp: pre-transposed / pre-merged / pre-projected weights (see prep_params).
    Returns a row/lane padded (Ns_p, Lp) slab; padded entries are zero.
    """
    Ns, Ds = self_emb.shape
    No, Do = other_emb.shape
    A = kp['w1q'].shape[1]
    Lp = kp['wg'].shape[1]
    kind = _device_kind()

    # generation-aware tiles
    if Ns >= 256 and 'v5' not in kind:
        TM = 256
    elif Ns >= 128:
        TM = 128
    else:
        TM = 16
    if No >= 512:
        TK = 256 if 'v5' in kind else 512
    elif No >= 256:
        TK = 256
    else:
        TK = 128

    Ns_p = _round_up(Ns, TM)
    No_p = _round_up(No, TK)
    vmem_limit = _vmem_limit_bytes()

    bf16 = jnp.bfloat16
    self_p = jnp.zeros((Ns_p, Ds), bf16).at[:Ns].set(self_emb.astype(bf16))
    other_p = jnp.zeros((No_p, Do), bf16).at[:No].set(other_emb.astype(bf16))
    adj_p = jnp.zeros((Ns_p, No_p), bf16).at[:Ns, :No].set(adj.astype(bf16))
    kproj_t = jnp.zeros((A, No_p), jnp.float32).at[:, :No].set(kp['kproj_t'])
    knn_p = jnp.zeros((Ns_p, Ns_p), bf16).at[:Ns, :Ns].set(knn_norm.astype(bf16))

    # ---- knn-average + linear (separate, fully tiled pallas_call) ----
    TKn = TM                      # K-tile that always divides Ns_p
    h_knn = pl.pallas_call(
        knn_avg_kernel,
        out_shape=jax.ShapeDtypeStruct((Ns_p, Lp), jnp.float32),
        grid_spec=pltpu.PrefetchScalarGridSpec(
            num_scalar_prefetch=0,
            grid=(Ns_p // TM, Ns_p // TKn),
            in_specs=[pl.BlockSpec((TM, TKn), lambda i, k: (i, k)),
                      pl.BlockSpec((TKn, Ds), lambda i, k: (k, 0)),
                      pl.BlockSpec((Ds, Lp), lambda i, k: (0, 0)),
                      pl.BlockSpec((1, Lp), lambda i, k: (0, 0))],
            out_specs=pl.BlockSpec((TM, Lp), lambda i, k: (i, 0)),
            scratch_shapes=[pltpu.VMEM((TM, Ds), jnp.float32)]),
        compiler_params=pltpu.CompilerParams(
            dimension_semantics=("parallel", "arbitrary"),
            vmem_limit_bytes=vmem_limit),
    )(knn_p, self_p, kp['wk'], kp['bk'])

    # ---- fused attention -> online softmax -> GCN + knn + SELU ----
    def full_spec(arr):
        shape = arr.shape
        return pl.BlockSpec(shape, lambda i, j: (0,) * len(shape))

    grid = (Ns_p // TM, No_p // TK)
    in_specs = [
        pl.BlockSpec((TM, Ds), lambda i, j: (i, 0)),     # self rows (query)
        pl.BlockSpec((A, TK), lambda i, j: (0, j)),      # precomputed key proj^T
        pl.BlockSpec((TK, Do), lambda i, j: (j, 0)),     # other embedding tile
        pl.BlockSpec((TM, TK), lambda i, j: (i, j)),     # bipartite adjacency
        pl.BlockSpec((TM, Lp), lambda i, j: (i, 0)),     # precomputed knn linear
        full_spec(kp['w1q']), full_spec(kp['b1']),
        full_spec(kp['w2']), full_spec(kp['b2']),
        full_spec(kp['wg']), full_spec(kp['bg']),
    ]
    out_spec = pl.BlockSpec((TM, Lp), lambda i, j: (i, 0))

    out = pl.pallas_call(
        make_fused_kernel(n_other=No, tk=TK, pad_cols=(No_p != No)),
        out_shape=jax.ShapeDtypeStruct((Ns_p, Lp), jnp.float32),
        grid_spec=pltpu.PrefetchScalarGridSpec(
            num_scalar_prefetch=0,
            grid=grid,
            in_specs=in_specs,
            out_specs=out_spec,
            scratch_shapes=[pltpu.VMEM((TM, A), jnp.float32),    # qs (per row tile)
                            pltpu.VMEM((TM, 1), jnp.float32),    # m (online softmax)
                            pltpu.VMEM((TM, 1), jnp.float32),    # l
                            pltpu.VMEM((TM, Do), jnp.float32)]),  # acc
        compiler_params=pltpu.CompilerParams(
            dimension_semantics=("parallel", "arbitrary"),
            vmem_limit_bytes=vmem_limit),
    )(self_p, kproj_t, other_p, adj_p, h_knn,
      kp['w1q'], kp['b1'], kp['w2'], kp['b2'], kp['wg'], kp['bg'])
    return out                      # (Ns_p, Lp); padded rows/cols are zero


# --------------------------------------------------------------------------
# Predict kernel: elementwise product -> MLP(SELU) -> prediction head (VPU
# reduce) -> BCE-with-logits loss + sigmoid.  Batch lives on the lane axis.
# --------------------------------------------------------------------------
def make_predict_kernel(n_mlp):
    def kernel(*refs):
        het_ref, hpt_ref, lab_ref = refs[0], refs[1], refs[2]
        layer_refs = refs[3:3 + 2 * n_mlp]
        wp_ref = refs[3 + 2 * n_mlp]
        bp_ref = refs[4 + 2 * n_mlp]
        loss_ref, prob_ref = refs[-2], refs[-1]

        x = het_ref[...] * hpt_ref[...]                     # (Lp, B): batch on lanes
        for layer in range(n_mlp):
            w = layer_refs[2 * layer][...]                  # (Dout, Din) torch layout
            b = layer_refs[2 * layer + 1][...]              # (Dout, 1)
            x = _selu(jnp.dot(w, x, preferred_element_type=jnp.float32) + b)
        # prediction head as a reduce, not an N=1 MXU matmul
        z = jnp.sum(x * wp_ref[...], axis=0, keepdims=True) + bp_ref[...]   # (1, B)
        y = lab_ref[...]
        # numerically-stable BCE-with-logits (mean reduction)
        per = jnp.maximum(z, 0.0) - z * y + jnp.log1p(jnp.exp(-jnp.abs(z)))
        loss_ref[...] = jnp.mean(per, keepdims=True)
        prob_ref[...] = jax.nn.sigmoid(z)
    return kernel


def predict_and_loss(he1, hp1, labels, kparams):
    B = he1.shape[0]
    n_mlp = len(kparams['mlp'])
    args = [jnp.transpose(he1), jnp.transpose(hp1),
            labels.reshape(1, B).astype(jnp.float32)]
    for (w, b) in kparams['mlp']:
        args += [w, b]
    args += [kparams['pred_w'], kparams['pred_b']]
    loss, probs = pl.pallas_call(
        make_predict_kernel(n_mlp),
        out_shape=(jax.ShapeDtypeStruct((1, 1), jnp.float32),
                   jax.ShapeDtypeStruct((1, B), jnp.float32)),
        in_specs=[_VMEM] * len(args),
        out_specs=(_VMEM, _VMEM),
    )(*args)
    return loss[0, 0], probs[0]


# --------------------------------------------------------------------------
# One-time layout prep: transposes, reshapes, bias merges, bf16 casts, the
# key-projection hoist, and lane-padding of the latent dim to 128.
# --------------------------------------------------------------------------
def prep_params(params):
    bf16 = jnp.bfloat16
    dis_emb = params['disease_embedding']
    drug_emb = params['drug_embedding']
    dis_dim = dis_emb.shape[1]
    drug_dim = drug_emb.shape[1]
    L = params['disease_gcn_w'].shape[0]
    Lp = _round_up(L, 128)

    def pad_last(x, n):
        pad = n - x.shape[-1]
        if pad <= 0:
            return x
        return jnp.pad(x, [(0, 0)] * (x.ndim - 1) + [(0, pad)])

    def side(w1, b1, w2, b2, gcn_w, gcn_wb, gcn_bp, knn_w, knn_b,
             other_emb, other_dim):
        w1k = w1[:, :other_dim]                                    # (A, Do) key half
        kproj_t = jnp.transpose(other_emb @ jnp.transpose(w1k))    # (A, No) hoisted
        return dict(
            kproj_t=kproj_t.astype(jnp.float32),
            w1q=jnp.transpose(w1[:, other_dim:]).astype(bf16),     # (Ds, A) query half
            b1=b1.reshape(1, -1).astype(jnp.float32),
            w2=w2.reshape(1, -1).astype(jnp.float32),              # (1, A)
            b2=b2.reshape(1, 1).astype(jnp.float32),
            wg=pad_last(jnp.transpose(gcn_w), Lp).astype(jnp.float32),   # (Do, Lp)
            bg=pad_last((gcn_wb + gcn_bp).reshape(1, -1), Lp).astype(jnp.float32),
            wk=pad_last(jnp.transpose(knn_w), Lp).astype(jnp.float32),   # (Ds, Lp)
            bk=pad_last(knn_b.reshape(1, -1), Lp).astype(jnp.float32),
        )

    mlp = []
    for li, (w, b) in enumerate(params['mlp']):
        wl = w.astype(jnp.float32)
        if li == 0:
            wl = pad_last(wl, Lp)        # consume the lane-padded latent slab
        mlp.append((wl, b.reshape(-1, 1).astype(jnp.float32)))

    pred_w = params['pred_w'].reshape(-1, 1).astype(jnp.float32)   # (D, 1)
    pred_b = params['pred_b'].reshape(1, 1).astype(jnp.float32)
    if not mlp:                           # no MLP: head consumes the latent slab
        pred_w = jnp.pad(pred_w, [(0, Lp - pred_w.shape[0]), (0, 0)])

    return dict(
        disease_embedding=dis_emb,
        drug_embedding=drug_emb,
        disease=side(params['dis_att_w1'], params['dis_att_b1'],
                     params['dis_att_w2'], params['dis_att_b2'],
                     params['disease_gcn_w'], params['disease_gcn_wb'],
                     params['disease_gcn_b'],
                     params['disease_w2'], params['disease_w2_b'],
                     other_emb=drug_emb, other_dim=drug_dim),
        drug=side(params['drug_att_w1'], params['drug_att_b1'],
                  params['drug_att_w2'], params['drug_att_b2'],
                  params['drug_gcn_w'], params['drug_gcn_wb'],
                  params['drug_gcn_b'],
                  params['drug_w3'], params['drug_w3_b'],
                  other_emb=dis_emb, other_dim=dis_dim),
        mlp=mlp,
        pred_w=pred_w,
        pred_b=pred_b,
    )


# --------------------------------------------------------------------------
# Full forward (attention_flag=True, disease_knn_number>0, drug_knn_number>0)
# --------------------------------------------------------------------------
def model_forward(kparams, e_p_adj, e_e_adj, p_p_adj,
                  input_disease, input_drug, labels):
    dis_emb = kparams['disease_embedding']
    drug_emb = kparams['drug_embedding']

    # pre-normalize knn adjacencies (row-scale by 1/degree); removes the
    # per-row-tile degree reduce + reciprocal from the kernel.
    e_e_norm = e_e_adj / (jnp.sum(e_e_adj, axis=-1, keepdims=True) + 1e-08)
    p_p_norm = p_p_adj / (jnp.sum(p_p_adj, axis=-1, keepdims=True) + 1e-08)

    # TODO(synk): if the adjacency matrices are static across forward calls,
    # hoist the transpose / padding / bf16 casts into prep_params.
    h_e = fused_node_update(dis_emb, drug_emb, e_p_adj, e_e_norm,
                            kparams['disease'])
    h_p = fused_node_update(drug_emb, dis_emb, jnp.transpose(e_p_adj),
                            p_p_norm, kparams['drug'])

    # TODO(synk): fuse this row gather into the predict kernel with
    # PrefetchScalarGridSpec + pl.Element index maps for large batches.
    he1 = jnp.take(h_e, input_disease, axis=0)      # (B, Lp) lane-dense rows
    hp1 = jnp.take(h_p, input_drug, axis=0)

    return predict_and_loss(he1, hp1, labels, kparams)


# --------------------------------------------------------------------------
# Pure-JAX reference (mirrors the PyTorch forward) for a correctness check.
# --------------------------------------------------------------------------
def ref_forward(params, e_p_adj, e_e_adj, p_p_adj,
                input_disease, input_drug, labels):
    dis = params['disease_embedding']
    drug = params['drug_embedding']

    def att(adj, other, self_emb, w1, b1, w2, b2):
        Ns, No = self_emb.shape[0], other.shape[0]
        q = jnp.broadcast_to(self_emb[:, None, :], (Ns, No, self_emb.shape[1]))
        k = jnp.broadcast_to(other[None, :, :], (Ns, No, other.shape[1]))
        kq = jnp.concatenate([k, q], axis=-1).reshape(Ns * No, -1)
        a = jax.nn.relu(kq @ w1.T + b1)
        a = jax.nn.relu(a @ w2.T + b2)
        a = a.reshape(Ns, No) * adj
        p = jax.nn.softmax(a, axis=1)
        return p @ other

    h_e_gcn = att(e_p_adj, drug, dis,
                  params['dis_att_w1'], params['dis_att_b1'],
                  params['dis_att_w2'], params['dis_att_b2'])
    h_e_gcn = h_e_gcn @ params['disease_gcn_w'].T + params['disease_gcn_wb'] \
              + params['disease_gcn_b']
    h_p_gcn = att(e_p_adj.T, dis, drug,
                  params['drug_att_w1'], params['drug_att_b1'],
                  params['drug_att_w2'], params['drug_att_b2'])
    h_p_gcn = h_p_gcn @ params['drug_gcn_w'].T + params['drug_gcn_wb'] \
              + params['drug_gcn_b']

    deg_e = e_e_adj.sum(1, keepdims=True) + 1e-08
    h_e_e = ((e_e_adj @ dis) / deg_e) @ params['disease_w2'].T + params['disease_w2_b']
    h_e = jax.nn.selu(h_e_gcn + h_e_e)

    deg_p = p_p_adj.sum(1, keepdims=True) + 1e-08
    h_p_p = ((p_p_adj @ drug) / deg_p) @ params['drug_w3'].T + params['drug_w3_b']
    h_p = jax.nn.selu(h_p_gcn + h_p_p)

    x = h_e[input_disease] * h_p[input_drug]
    for (w, b) in params['mlp']:
        x = jax.nn.selu(x @ w.T + b)
    z = (x @ params['pred_w'].T + params['pred_b']).squeeze()
    per = jnp.maximum(z, 0.0) - z * labels + jnp.log1p(jnp.exp(-jnp.abs(z)))
    return per.mean(), jax.nn.sigmoid(z)


# --------------------------------------------------------------------------
def init_params(key, cfg):
    dd, gd = cfg['disease_dim'], cfg['drug_dim']
    ld, ad = cfg['latent_dim'], cfg['atten_dim']
    ks = iter(jax.random.split(key, 20))

    def lin(k, out_dim, in_dim, scale=0.3):
        kw, kb = jax.random.split(k)
        return (scale * jax.random.normal(kw, (out_dim, in_dim), jnp.float32),
                scale * jax.random.normal(kb, (out_dim,), jnp.float32))

    p = {}
    p['disease_embedding'] = 0.5 * jax.random.normal(
        next(ks), (cfg['disease_size'], dd), jnp.float32)
    p['drug_embedding'] = 0.5 * jax.random.normal(
        next(ks), (cfg['drug_size'], gd), jnp.float32)
    p['disease_gcn_w'], p['disease_gcn_wb'] = lin(next(ks), ld, gd)
    p['disease_gcn_b'] = jnp.zeros((ld,), jnp.float32)           # nn.Parameter(zeros)
    p['drug_gcn_w'], p['drug_gcn_wb'] = lin(next(ks), ld, dd)
    p['drug_gcn_b'] = jnp.zeros((ld,), jnp.float32)
    p['dis_att_w1'], p['dis_att_b1'] = lin(next(ks), ad, dd + gd)
    p['dis_att_w2'], p['dis_att_b2'] = lin(next(ks), 1, ad)
    p['drug_att_w1'], p['drug_att_b1'] = lin(next(ks), ad, dd + gd)
    p['drug_att_w2'], p['drug_att_b2'] = lin(next(ks), 1, ad)
    p['disease_w2'], p['disease_w2_b'] = lin(next(ks), ld, dd)
    p['drug_w3'], p['drug_w3_b'] = lin(next(ks), ld, gd)
    mlp, in_dim = [], ld
    for _ in range(cfg['mlp_layer_num']):
        mlp.append(lin(next(ks), dd, in_dim))
        in_dim = dd
    p['mlp'] = mlp
    p['pred_w'], p['pred_b'] = lin(next(ks), 1, dd)
    return p


if __name__ == "__main__":
    cfg = dict(lr=1e-3, batch_size=8, disease_dim=8, drug_dim=6,
               disease_size=16, drug_size=12, latent_dim=10,
               attention_flag=True, atten_dim=8, l2=0.0, mlp_layer_num=2,
               disease_knn_number=3, drug_knn_number=3)

    root = jax.random.PRNGKey(0)
    kp, k1, k2, k3, k4, k5, k6 = jax.random.split(root, 7)
    params = init_params(kp, cfg)
    kparams = prep_params(params)        # hoisted layout / projection prep

    Ne, Np, B = cfg['disease_size'], cfg['drug_size'], cfg['batch_size']
    e_p_adj = (jax.random.uniform(k1, (Ne, Np)) < 0.4).astype(jnp.float32)
    e_e_adj = (jax.random.uniform(k2, (Ne, Ne)) < 0.3).astype(jnp.float32)
    p_p_adj = (jax.random.uniform(k3, (Np, Np)) < 0.3).astype(jnp.float32)
    input_disease = jax.random.randint(k4, (B,), 0, Ne)
    input_drug = jax.random.randint(k5, (B,), 0, Np)
    labels = (jax.random.uniform(k6, (B,)) < 0.5).astype(jnp.float32)

    fwd = jax.jit(model_forward)
    loss, probs = fwd(kparams, e_p_adj, e_e_adj, p_p_adj,
                      input_disease, input_drug, labels)
    jax.block_until_ready((loss, probs))

    ref_loss, ref_probs = ref_forward(params, e_p_adj, e_e_adj, p_p_adj,
                                      input_disease, input_drug, labels)
    np.testing.assert_allclose(np.asarray(loss), np.asarray(ref_loss),
                               rtol=2e-2, atol=2e-2)
    np.testing.assert_allclose(np.asarray(probs), np.asarray(ref_probs),
                               rtol=2e-2, atol=2e-2)
    print("KERNEL_OK")
</pallas_src>

<mosaic_0001>
module attributes {stable_mosaic.version = 11 : i64} {
  func.func @knn_avg_kernel(%arg0: i32, %arg1: i32, %arg2: memref<16x16xbf16, #tpu.memory_space<vmem>>, %arg3: memref<16x8xbf16, #tpu.memory_space<vmem>>, %arg4: memref<8x128xf32, #tpu.memory_space<vmem>>, %arg5: memref<1x128xf32, #tpu.memory_space<vmem>>, %arg6: memref<16x128xf32, #tpu.memory_space<vmem>>, %arg7: memref<16x8xf32, #tpu.memory_space<vmem>>) attributes {dimension_semantics = [#tpu.dimension_semantics<parallel>, #tpu.dimension_semantics<arbitrary>], iteration_bounds = array<i64: 1, 1>, scalar_prefetch = 0 : i64, scratch_operands = 1 : i64, tpu.core_type = #tpu.core_type<tc>, window_params = [{transform_indices = @transform_0, window_bounds = array<i64: 16, 16>}, {transform_indices = @transform_1, window_bounds = array<i64: 16, 8>}, {pipeline_mode = #tpu.pipeline_mode<synchronous>, transform_indices = @transform_2, window_bounds = array<i64: 8, 128>}, {pipeline_mode = #tpu.pipeline_mode<synchronous>, transform_indices = @transform_3, window_bounds = array<i64: 1, 128>}, {transform_indices = @transform_4, window_bounds = array<i64: 16, 128>}]} {
    %c0_i32 = arith.constant 0 : i32
    %0 = arith.cmpi eq, %arg1, %c0_i32 : i32
    %1 = arith.extui %0 : i1 to i32
    %c0_i32_0 = arith.constant 0 : i32
    %2 = arith.cmpi ne, %1, %c0_i32_0 : i32
    scf.if %2 {
      %cst_10 = arith.constant 0.000000e+00 : f32
      %12 = vector.broadcast %cst_10 : f32 to vector<16x8xf32>
      %c0_11 = arith.constant 0 : index
      %c0_12 = arith.constant 0 : index
      %13 = vector.load %arg7[%c0_11, %c0_12] : memref<16x8xf32, #tpu.memory_space<vmem>>, vector<16x8xf32>
      tpu.vector_store %arg7[%c0_11, %c0_12], %12 {strides = array<i32>} : memref<16x8xf32, #tpu.memory_space<vmem>>, vector<16x8xf32>,
    } else {
    }
    %c0 = arith.constant 0 : index
    %c0_1 = arith.constant 0 : index
    %3 = vector.load %arg7[%c0, %c0_1] : memref<16x8xf32, #tpu.memory_space<vmem>>, vector<16x8xf32>
    %c0_2 = arith.constant 0 : index
    %c0_3 = arith.constant 0 : index
    %4 = vector.load %arg2[%c0_2, %c0_3] : memref<16x16xbf16, #tpu.memory_space<vmem>>, vector<16x16xbf16>
    %c0_4 = arith.constant 0 : index
    %c0_5 = arith.constant 0 : index
    %5 = vector.load %arg3[%c0_4, %c0_5] : memref<16x8xbf16, #tpu.memory_space<vmem>>, vector<16x8xbf16>
    %cst = arith.constant dense<0.000000e+00> : vector<16x8xf32>
    %6 = tpu.matmul %4, %5, %cst {dimension_numbers = #tpu.dot_dimension_numbers<[1], [0], [0], [1], [0, 0, 1, 1], [], []>} : vector<16x16xbf16>, vector<16x8xbf16>, vector<16x8xf32> -> vector<16x8xf32>
    %7 = arith.addf %3, %6 : vector<16x8xf32>
    %c0_6 = arith.constant 0 : index
    %c0_7 = arith.constant 0 : index
    %8 = vector.load %arg7[%c0_6, %c0_7] : memref<16x8xf32, #tpu.memory_space<vmem>>, vector<16x8xf32>
    tpu.vector_store %arg7[%c0_6, %c0_7], %7 {strides = array<i32>} : memref<16x8xf32, #tpu.memory_space<vmem>>, vector<16x8xf32>,
    %c0_i32_8 = arith.constant 0 : i32
    %9 = arith.cmpi eq, %arg1, %c0_i32_8 : i32
    %10 = arith.extui %9 : i1 to i32
    %c0_i32_9 = arith.constant 0 : i32
    %11 = arith.cmpi ne, %10, %c0_i32_9 : i32
    scf.if %11 {
      %c0_10 = arith.constant 0 : index
      %c0_11 = arith.constant 0 : index
      %12 = vector.load %arg7[%c0_10, %c0_11] : memref<16x8xf32, #tpu.memory_space<vmem>>, vector<16x8xf32>
      %c0_12 = arith.constant 0 : index
      %c0_13 = arith.constant 0 : index
      %13 = vector.load %arg4[%c0_12, %c0_13] : memref<8x128xf32, #tpu.memory_space<vmem>>, vector<8x128xf32>
      %cst_14 = arith.constant dense<0.000000e+00> : vector<16x128xf32>
      %14 = tpu.matmul %12, %13, %cst_14 {dimension_numbers = #tpu.dot_dimension_numbers<[1], [0], [0], [1], [0, 0, 1, 1], [], []>} : vector<16x8xf32>, vector<8x128xf32>, vector<16x128xf32> -> vector<16x128xf32>
      %c0_15 = arith.constant 0 : index
      %c0_16 = arith.constant 0 : index
      %15 = vector.load %arg5[%c0_15, %c0_16] : memref<1x128xf32, #tpu.memory_space<vmem>>, vector<1x128xf32>
      %16 = vector.broadcast %15 : vector<1x128xf32> to vector<16x128xf32>
      %17 = arith.addf %14, %16 : vector<16x128xf32>
      %c0_17 = arith.constant 0 : index
      %c0_18 = arith.constant 0 : index
      %18 = vector.load %arg6[%c0_17, %c0_18] : memref<16x128xf32, #tpu.memory_space<vmem>>, vector<16x128xf32>
      tpu.vector_store %arg6[%c0_17, %c0_18], %17 {strides = array<i32>} : memref<16x128xf32, #tpu.memory_space<vmem>>, vector<16x128xf32>,
    } else {
    }
    return
  }
  func.func @transform_0(%arg0: i32, %arg1: i32) -> (i32, i32) {
    %c0_i32 = arith.constant 0 : i32
    return %arg0, %arg1 : i32, i32
  }
  func.func @transform_1(%arg0: i32, %arg1: i32) -> (i32, i32) {
    %c0_i32 = arith.constant 0 : i32
    %c0_i32_0 = arith.constant 0 : i32
    return %arg1, %c0_i32 : i32, i32
  }
  func.func @transform_2(%arg0: i32, %arg1: i32) -> (i32, i32) {
    %c0_i32 = arith.constant 0 : i32
    %c0_i32_0 = arith.constant 0 : i32
    %c0_i32_1 = arith.constant 0 : i32
    return %c0_i32, %c0_i32_0 : i32, i32
  }
  func.func @transform_3(%arg0: i32, %arg1: i32) -> (i32, i32) {
    %c0_i32 = arith.constant 0 : i32
    %c0_i32_0 = arith.constant 0 : i32
    %c0_i32_1 = arith.constant 0 : i32
    return %c0_i32, %c0_i32_0 : i32, i32
  }
  func.func @transform_4(%arg0: i32, %arg1: i32) -> (i32, i32) {
    %c0_i32 = arith.constant 0 : i32
    %c0_i32_0 = arith.constant 0 : i32
    return %arg0, %c0_i32 : i32, i32
  }
}

module attributes {stable_mosaic.version = 11 : i64} {
  func.func @kernel(%arg0: i32, %arg1: i32, %arg2: memref<16x8xbf16, #tpu.memory_space<vmem>>, %arg3: memref<8x128xf32, #tpu.memory_space<vmem>>, %arg4: memref<128x6xbf16, #tpu.memory_space<vmem>>, %arg5: memref<16x128xbf16, #tpu.memory_space<vmem>>, %arg6: memref<16x128xf32, #tpu.memory_space<vmem>>, %arg7: memref<8x8xbf16, #tpu.memory_space<vmem>>, %arg8: memref<1x8xf32, #tpu.memory_space<vmem>>, %arg9: memref<1x8xf32, #tpu.memory_space<vmem>>, %arg10: memref<1x1xf32, #tpu.memory_space<vmem>>, %arg11: memref<6x128xf32, #tpu.memory_space<vmem>>, %arg12: memref<1x128xf32, #tpu.memory_space<vmem>>, %arg13: memref<16x128xf32, #tpu.memory_space<vmem>>, %arg14: memref<16x8xf32, #tpu.memory_space<vmem>>, %arg15: memref<16x1xf32, #tpu.memory_space<vmem>>, %arg16: memref<16x1xf32, #tpu.memory_space<vmem>>, %arg17: memref<16x6xf32, #tpu.memory_space<vmem>>) attributes {dimension_semantics = [#tpu.dimension_semantics<parallel>, #tpu.dimension_semantics<arbitrary>], iteration_bounds = array<i64: 1, 1>, scalar_prefetch = 0 : i64, scratch_operands = 4 : i64, tpu.core_type = #tpu.core_type<tc>, window_params = [{transform_indices = @transform_0, window_bounds = array<i64: 16, 8>}, {transform_indices = @transform_1, window_bounds = array<i64: 8, 128>}, {transform_indices = @transform_2, window_bounds = array<i64: 128, 6>}, {transform_indices = @transform_3, window_bounds = array<i64: 16, 128>}, {transform_indices = @transform_4, window_bounds = array<i64: 16, 128>}, {pipeline_mode = #tpu.pipeline_mode<synchronous>, transform_indices = @transform_5, window_bounds = array<i64: 8, 8>}, {pipeline_mode = #tpu.pipeline_mode<synchronous>, transform_indices = @transform_6, window_bounds = array<i64: 1, 8>}, {pipeline_mode = #tpu.pipeline_mode<synchronous>, transform_indices = @transform_7, window_bounds = array<i64: 1, 8>}, {pipeline_mode = #tpu.pipeline_mode<synchronous>, transform_indices = @transform_8, window_bounds = array<i64: 1, 1>}, {pipeline_mode = #tpu.pipeline_mode<synchronous>, transform_indices = @transform_9, window_bounds = array<i64: 6, 128>}, {pipeline_mode = #tpu.pipeline_mode<synchronous>, transform_indices = @transform_10, window_bounds = array<i64: 1, 128>}, {transform_indices = @transform_11, window_bounds = array<i64: 16, 128>}]} {
    %c0_i32 = arith.constant 0 : i32
    %0 = arith.cmpi eq, %arg1, %c0_i32 : i32
    %1 = arith.extui %0 : i1 to i32
    %c0_i32_0 = arith.constant 0 : i32
    %2 = arith.cmpi ne, %1, %c0_i32_0 : i32
    scf.if %2 {
      %c0_48 = arith.constant 0 : index
      %c0_49 = arith.constant 0 : index
      %138 = vector.load %arg2[%c0_48, %c0_49] : memref<16x8xbf16, #tpu.memory_space<vmem>>, vector<16x8xbf16>
      %c0_50 = arith.constant 0 : index
      %c0_51 = arith.constant 0 : index
      %139 = vector.load %arg7[%c0_50, %c0_51] : memref<8x8xbf16, #tpu.memory_space<vmem>>, vector<8x8xbf16>
      %cst_52 = arith.constant dense<0.000000e+00> : vector<16x8xf32>
      %140 = tpu.matmul %138, %139, %cst_52 {dimension_numbers = #tpu.dot_dimension_numbers<[1], [0], [0], [1], [0, 0, 1, 1], [], []>} : vector<16x8xbf16>, vector<8x8xbf16>, vector<16x8xf32> -> vector<16x8xf32>
      %c0_53 = arith.constant 0 : index
      %c0_54 = arith.constant 0 : index
      %141 = vector.load %arg8[%c0_53, %c0_54] : memref<1x8xf32, #tpu.memory_space<vmem>>, vector<1x8xf32>
      %142 = vector.broadcast %141 : vector<1x8xf32> to vector<16x8xf32>
      %143 = arith.addf %140, %142 : vector<16x8xf32>
      %c0_55 = arith.constant 0 : index
      %c0_56 = arith.constant 0 : index
      %144 = vector.load %arg14[%c0_55, %c0_56] : memref<16x8xf32, #tpu.memory_space<vmem>>, vector<16x8xf32>
      tpu.vector_store %arg14[%c0_55, %c0_56], %143 {strides = array<i32>} : memref<16x8xf32, #tpu.memory_space<vmem>>, vector<16x8xf32>,
      %cst_57 = arith.constant -1.000000e+30 : f32
      %145 = vector.broadcast %cst_57 : f32 to vector<16x1xf32>
      %c0_58 = arith.constant 0 : index
      %c0_59 = arith.constant 0 : index
      %146 = vector.load %arg15[%c0_58, %c0_59] : memref<16x1xf32, #tpu.memory_space<vmem>>, vector<16x1xf32>
      tpu.vector_store %arg15[%c0_58, %c0_59], %145 {strides = array<i32>} : memref<16x1xf32, #tpu.memory_space<vmem>>, vector<16x1xf32>,
      %cst_60 = arith.constant 0.000000e+00 : f32
      %147 = vector.broadcast %cst_60 : f32 to vector<16x1xf32>
      %c0_61 = arith.constant 0 : index
      %c0_62 = arith.constant 0 : index
      %148 = vector.load %arg16[%c0_61, %c0_62] : memref<16x1xf32, #tpu.memory_space<vmem>>, vector<16x1xf32>
      tpu.vector_store %arg16[%c0_61, %c0_62], %147 {strides = array<i32>} : memref<16x1xf32, #tpu.memory_space<vmem>>, vector<16x1xf32>,
      %cst_63 = arith.constant 0.000000e+00 : f32
      %149 = vector.broadcast %cst_63 : f32 to vector<16x6xf32>
      %c0_64 = arith.constant 0 : index
      %c0_65 = arith.constant 0 : index
      %150 = vector.load %arg17[%c0_64, %c0_65] : memref<16x6xf32, #tpu.memory_space<vmem>>, vector<16x6xf32>
      tpu.vector_store %arg17[%c0_64, %c0_65], %149 {strides = array<i32>} : memref<16x6xf32, #tpu.memory_space<vmem>>, vector<16x6xf32>,
    } else {
    }
    %c0 = arith.constant 0 : index
    %c0_1 = arith.constant 0 : index
    %3 = vector.load %arg14[%c0, %c0_1] : memref<16x8xf32, #tpu.memory_space<vmem>>, vector<16x8xf32>
    %c0_2 = arith.constant 0 : index
    %c0_3 = arith.constant 0 : index
    %4 = vector.load %arg3[%c0_2, %c0_3] : memref<8x128xf32, #tpu.memory_space<vmem>>, vector<8x128xf32>
    %cst = arith.constant 0.000000e+00 : f32
    %5 = vector.broadcast %cst : f32 to vector<16x128xf32>
    %6 = vector.extract_strided_slice %3 {offsets = [0, 0], sizes = [16, 1], strides = [1, 1]} : vector<16x8xf32> to vector<16x1xf32>
    %7 = vector.extract_strided_slice %4 {offsets = [0, 0], sizes = [1, 128], strides = [1, 1]} : vector<8x128xf32> to vector<1x128xf32>
    %8 = vector.broadcast %6 : vector<16x1xf32> to vector<16x128xf32>
    %9 = vector.broadcast %7 : vector<1x128xf32> to vector<16x128xf32>
    %10 = arith.addf %8, %9 : vector<16x128xf32>
    %cst_4 = arith.constant 0.000000e+00 : f32
    %11 = vector.broadcast %cst_4 : f32 to vector<16x128xf32>
    %12 = arith.maximumf %10, %11 : vector<16x128xf32>
    %c0_5 = arith.constant 0 : index
    %c0_6 = arith.constant 0 : index
    %13 = vector.load %arg9[%c0_5, %c0_6] : memref<1x8xf32, #tpu.memory_space<vmem>>, vector<1x1xf32>
    %14 = vector.broadcast %13 : vector<1x1xf32> to vector<16x128xf32>
    %15 = arith.mulf %12, %14 : vector<16x128xf32>
    %16 = arith.addf %5, %15 : vector<16x128xf32>
    %17 = vector.extract_strided_slice %3 {offsets = [0, 1], sizes = [16, 1], strides = [1, 1]} : vector<16x8xf32> to vector<16x1xf32>
    %18 = vector.extract_strided_slice %4 {offsets = [1, 0], sizes = [1, 128], strides = [1, 1]} : vector<8x128xf32> to vector<1x128xf32>
    %19 = vector.broadcast %17 : vector<16x1xf32> to vector<16x128xf32>
    %20 = vector.broadcast %18 : vector<1x128xf32> to vector<16x128xf32>
    %21 = arith.addf %19, %20 : vector<16x128xf32>
    %cst_7 = arith.constant 0.000000e+00 : f32
    %22 = vector.broadcast %cst_7 : f32 to vector<16x128xf32>
    %23 = arith.maximumf %21, %22 : vector<16x128xf32>
    %c0_8 = arith.constant 0 : index
    %c1 = arith.constant 1 : index
    %24 = vector.load %arg9[%c0_8, %c1] : memref<1x8xf32, #tpu.memory_space<vmem>>, vector<1x1xf32>
    %25 = vector.broadcast %24 : vector<1x1xf32> to vector<16x128xf32>
    %26 = arith.mulf %23, %25 : vector<16x128xf32>
    %27 = arith.addf %16, %26 : vector<16x128xf32>
    %28 = vector.extract_strided_slice %3 {offsets = [0, 2], sizes = [16, 1], strides = [1, 1]} : vector<16x8xf32> to vector<16x1xf32>
    %29 = vector.extract_strided_slice %4 {offsets = [2, 0], sizes = [1, 128], strides = [1, 1]} : vector<8x128xf32> to vector<1x128xf32>
    %30 = vector.broadcast %28 : vector<16x1xf32> to vector<16x128xf32>
    %31 = vector.broadcast %29 : vector<1x128xf32> to vector<16x128xf32>
    %32 = arith.addf %30, %31 : vector<16x128xf32>
    %cst_9 = arith.constant 0.000000e+00 : f32
    %33 = vector.broadcast %cst_9 : f32 to vector<16x128xf32>
    %34 = arith.maximumf %32, %33 : vector<16x128xf32>
    %c0_10 = arith.constant 0 : index
    %c2 = arith.constant 2 : index
    %35 = vector.load %arg9[%c0_10, %c2] : memref<1x8xf32, #tpu.memory_space<vmem>>, vector<1x1xf32>
    %36 = vector.broadcast %35 : vector<1x1xf32> to vector<16x128xf32>
    %37 = arith.mulf %34, %36 : vector<16x128xf32>
    %38 = arith.addf %27, %37 : vector<16x128xf32>
    %39 = vector.extract_strided_slice %3 {offsets = [0, 3], sizes = [16, 1], strides = [1, 1]} : vector<16x8xf32> to vector<16x1xf32>
    %40 = vector.extract_strided_slice %4 {offsets = [3, 0], sizes = [1, 128], strides = [1, 1]} : vector<8x128xf32> to vector<1x128xf32>
    %41 = vector.broadcast %39 : vector<16x1xf32> to vector<16x128xf32>
    %42 = vector.broadcast %40 : vector<1x128xf32> to vector<16x128xf32>
    %43 = arith.addf %41, %42 : vector<16x128xf32>
    %cst_11 = arith.constant 0.000000e+00 : f32
    %44 = vector.broadcast %cst_11 : f32 to vector<16x128xf32>
    %45 = arith.maximumf %43, %44 : vector<16x128xf32>
    %c0_12 = arith.constant 0 : index
    %c3 = arith.constant 3 : index
    %46 = vector.load %arg9[%c0_12, %c3] : memref<1x8xf32, #tpu.memory_space<vmem>>, vector<1x1xf32>
    %47 = vector.broadcast %46 : vector<1x1xf32> to vector<16x128xf32>
    %48 = arith.mulf %45, %47 : vector<16x128xf32>
    %49 = arith.addf %38, %48 : vector<16x128xf32>
    %50 = vector.extract_strided_slice %3 {offsets = [0, 4], sizes = [16, 1], strides = [1, 1]} : vector<16x8xf32> to vector<16x1xf32>
    %51 = vector.extract_strided_slice %4 {offsets = [4, 0], sizes = [1, 128], strides = [1, 1]} : vector<8x128xf32> to vector<1x128xf32>
    %52 = vector.broadcast %50 : vector<16x1xf32> to vector<16x128xf32>
    %53 = vector.broadcast %51 : vector<1x128xf32> to vector<16x128xf32>
    %54 = arith.addf %52, %53 : vector<16x128xf32>
    %cst_13 = arith.constant 0.000000e+00 : f32
    %55 = vector.broadcast %cst_13 : f32 to vector<16x128xf32>
    %56 = arith.maximumf %54, %55 : vector<16x128xf32>
    %c0_14 = arith.constant 0 : index
    %c4 = arith.constant 4 : index
    %57 = vector.load %arg9[%c0_14, %c4] : memref<1x8xf32, #tpu.memory_space<vmem>>, vector<1x1xf32>
    %58 = vector.broadcast %57 : vector<1x1xf32> to vector<16x128xf32>
    %59 = arith.mulf %56, %58 : vector<16x128xf32>
    %60 = arith.addf %49, %59 : vector<16x128xf32>
    %61 = vector.extract_strided_slice %3 {offsets = [0, 5], sizes = [16, 1], strides = [1, 1]} : vector<16x8xf32> to vector<16x1xf32>
    %62 = vector.extract_strided_slice %4 {offsets = [5, 0], sizes = [1, 128], strides = [1, 1]} : vector<8x128xf32> to vector<1x128xf32>
    %63 = vector.broadcast %61 : vector<16x1xf32> to vector<16x128xf32>
    %64 = vector.broadcast %62 : vector<1x128xf32> to vector<16x128xf32>
    %65 = arith.addf %63, %64 : vector<16x128xf32>
    %cst_15 = arith.constant 0.000000e+00 : f32
    %66 = vector.broadcast %cst_15 : f32 to vector<16x128xf32>
    %67 = arith.maximumf %65, %66 : vector<16x128xf32>
    %c0_16 = arith.constant 0 : index
    %c5 = arith.constant 5 : index
    %68 = vector.load %arg9[%c0_16, %c5] : memref<1x8xf32, #tpu.memory_space<vmem>>, vector<1x1xf32>
    %69 = vector.broadcast %68 : vector<1x1xf32> to vector<16x128xf32>
    %70 = arith.mulf %67, %69 : vector<16x128xf32>
    %71 = arith.addf %60, %70 : vector<16x128xf32>
    %72 = vector.extract_strided_slice %3 {offsets = [0, 6], sizes = [16, 1], strides = [1, 1]} : vector<16x8xf32> to vector<16x1xf32>
    %73 = vector.extract_strided_slice %4 {offsets = [6, 0], sizes = [1, 128], strides = [1, 1]} : vector<8x128xf32> to vector<1x128xf32>
    %74 = vector.broadcast %72 : vector<16x1xf32> to vector<16x128xf32>
    %75 = vector.broadcast %73 : vector<1x128xf32> to vector<16x128xf32>
    %76 = arith.addf %74, %75 : vector<16x128xf32>
    %cst_17 = arith.constant 0.000000e+00 : f32
    %77 = vector.broadcast %cst_17 : f32 to vector<16x128xf32>
    %78 = arith.maximumf %76, %77 : vector<16x128xf32>
    %c0_18 = arith.constant 0 : index
    %c6 = arith.constant 6 : index
    %79 = vector.load %arg9[%c0_18, %c6] : memref<1x8xf32, #tpu.memory_space<vmem>>, vector<1x1xf32>
    %80 = vector.broadcast %79 : vector<1x1xf32> to vector<16x128xf32>
    %81 = arith.mulf %78, %80 : vector<16x128xf32>
    %82 = arith.addf %71, %81 : vector<16x128xf32>
    %83 = vector.extract_strided_slice %3 {offsets = [0, 7], sizes = [16, 1], strides = [1, 1]} : vector<16x8xf32> to vector<16x1xf32>
    %84 = vector.extract_strided_slice %4 {offsets = [7, 0], sizes = [1, 128], strides = [1, 1]} : vector<8x128xf32> to vector<1x128xf32>
    %85 = vector.broadcast %83 : vector<16x1xf32> to vector<16x128xf32>
    %86 = vector.broadcast %84 : vector<1x128xf32> to vector<16x128xf32>
    %87 = arith.addf %85, %86 : vector<16x128xf32>
    %cst_19 = arith.constant 0.000000e+00 : f32
    %88 = vector.broadcast %cst_19 : f32 to vector<16x128xf32>
    %89 = arith.maximumf %87, %88 : vector<16x128xf32>
    %c0_20 = arith.constant 0 : index
    %c7 = arith.constant 7 : index
    %90 = vector.load %arg9[%c0_20, %c7] : memref<1x8xf32, #tpu.memory_space<vmem>>, vector<1x1xf32>
    %91 = vector.broadcast %90 : vector<1x1xf32> to vector<16x128xf32>
    %92 = arith.mulf %89, %91 : vector<16x128xf32>
    %93 = arith.addf %82, %92 : vector<16x128xf32>
    %c0_21 = arith.constant 0 : index
    %c0_22 = arith.constant 0 : index
    %94 = vector.load %arg10[%c0_21, %c0_22] : memref<1x1xf32, #tpu.memory_space<vmem>>, vector<1x1xf32>
    %95 = vector.broadcast %94 : vector<1x1xf32> to vector<16x128xf32>
    %96 = arith.addf %93, %95 : vector<16x128xf32>
    %cst_23 = arith.constant 0.000000e+00 : f32
    %97 = vector.broadcast %cst_23 : f32 to vector<16x128xf32>
    %98 = arith.maximumf %96, %97 : vector<16x128xf32>
    %c0_24 = arith.constant 0 : index
    %c0_25 = arith.constant 0 : index
    %99 = vector.load %arg5[%c0_24, %c0_25] : memref<16x128xbf16, #tpu.memory_space<vmem>>, vector<16x128xbf16>
    %100 = arith.extf %99 : vector<16x128xbf16> to vector<16x128xf32>
    %101 = arith.mulf %98, %100 : vector<16x128xf32>
    %c128_i32 = arith.constant 128 : i32
    %102 = arith.muli %arg1, %c128_i32 : i32
    %103 = tpu.iota {dimensions = array<i32: 1>} : vector<16x128xi32>
    %104 = vector.broadcast %102 : i32 to vector<16x128xi32>
    %105 = arith.addi %104, %103 : vector<16x128xi32>
    %c12_i32 = arith.constant 12 : i32
    %106 = vector.broadcast %c12_i32 : i32 to vector<16x128xi32>
    %107 = arith.cmpi slt, %105, %106 : vector<16x128xi32>
    %cst_26 = arith.constant -1.000000e+30 : f32
    %108 = vector.broadcast %cst_26 : f32 to vector<16x128xf32>
    %109 = arith.select %107, %101, %108 : vector<16x128xi1>, vector<16x128xf32>
    %cst_27 = arith.constant dense<0xFF800000> : vector<16xf32>
    %110 = vector.multi_reduction <maximumf>, %109, %cst_27 [1] : vector<16x128xf32> to vector<16xf32>
    %111 = vector.shape_cast %110 : vector<16xf32> to vector<16x1xf32>
    %c0_28 = arith.constant 0 : index
    %c0_29 = arith.constant 0 : index
    %112 = vector.load %arg15[%c0_28, %c0_29] : memref<16x1xf32, #tpu.memory_space<vmem>>, vector<16x1xf32>
    %113 = arith.maximumf %112, %111 : vector<16x1xf32>
    %c0_30 = arith.constant 0 : index
    %c0_31 = arith.constant 0 : index
    %114 = vector.load %arg15[%c0_30, %c0_31] : memref<16x1xf32, #tpu.memory_space<vmem>>, vector<16x1xf32>
    %115 = arith.subf %114, %113 : vector<16x1xf32>
    %116 = math.exp %115 : vector<16x1xf32>
    %117 = vector.broadcast %113 : vector<16x1xf32> to vector<16x128xf32>
    %118 = arith.subf %109, %117 : vector<16x128xf32>
    %119 = math.exp %118 : vector<16x128xf32>
    %c0_32 = arith.constant 0 : index
    %c0_33 = arith.constant 0 : index
    %120 = vector.load %arg16[%c0_32, %c0_33] : memref<16x1xf32, #tpu.memory_space<vmem>>, vector<16x1xf32>
    %121 = arith.mulf %116, %120 : vector<16x1xf32>
    %cst_34 = arith.constant dense<0.000000e+00> : vector<16xf32>
    %122 = vector.multi_reduction <add>, %119, %cst_34 [1] : vector<16x128xf32> to vector<16xf32>
    %123 = vector.shape_cast %122 : vector<16xf32> to vector<16x1xf32>
    %124 = arith.addf %121, %123 : vector<16x1xf32>
    %c0_35 = arith.constant 0 : index
    %c0_36 = arith.constant 0 : index
    %125 = vector.load %arg16[%c0_35, %c0_36] : memref<16x1xf32, #tpu.memory_space<vmem>>, vector<16x1xf32>
    tpu.vector_store %arg16[%c0_35, %c0_36], %124 {strides = array<i32>} : memref<16x1xf32, #tpu.memory_space<vmem>>, vector<16x1xf32>,
    %c0_37 = arith.constant 0 : index
    %c0_38 = arith.constant 0 : index
    %126 = vector.load %arg17[%c0_37, %c0_38] : memref<16x6xf32, #tpu.memory_space<vmem>>, vector<16x6xf32>
    %127 = vector.broadcast %116 : vector<16x1xf32> to vector<16x6xf32>
    %128 = arith.mulf %127, %126 : vector<16x6xf32>
    %129 = arith.truncf %119 : vector<16x128xf32> to vector<16x128xbf16>
    %c0_39 = arith.constant 0 : index
    %c0_40 = arith.constant 0 : index
    %130 = vector.load %arg4[%c0_39, %c0_40] : memref<128x6xbf16, #tpu.memory_space<vmem>>, vector<128x6xbf16>
    %cst_41 = arith.constant dense<0.000000e+00> : vector<16x6xf32>
    %131 = tpu.matmul %129, %130, %cst_41 {dimension_numbers = #tpu.dot_dimension_numbers<[1], [0], [0], [1], [0, 0, 1, 1], [], []>} : vector<16x128xbf16>, vector<128x6xbf16>, vector<16x6xf32> -> vector<16x6xf32>
    %132 = arith.addf %128, %131 : vector<16x6xf32>
    %c0_42 = arith.constant 0 : index
    %c0_43 = arith.constant 0 : index
    %133 = vector.load %arg17[%c0_42, %c0_43] : memref<16x6xf32, #tpu.memory_space<vmem>>, vector<16x6xf32>
    tpu.vector_store %arg17[%c0_42, %c0_43], %132 {strides = array<i32>} : memref<16x6xf32, #tpu.memory_space<vmem>>, vector<16x6xf32>,
    %c0_44 = arith.constant 0 : index
    %c0_45 = arith.constant 0 : index
    %134 = vector.load %arg15[%c0_44, %c0_45] : memref<16x1xf32, #tpu.memory_space<vmem>>, vector<16x1xf32>
    tpu.vector_store %arg15[%c0_44, %c0_45], %113 {strides = array<i32>} : memref<16x1xf32, #tpu.memory_space<vmem>>, vector<16x1xf32>,
    %c0_i32_46 = arith.constant 0 : i32
    %135 = arith.cmpi eq, %arg1, %c0_i32_46 : i32
    %136 = arith.extui %135 : i1 to i32
    %c0_i32_47 = arith.constant 0 : i32
    %137 = arith.cmpi ne, %136, %c0_i32_47 : i32
    scf.if %137 {
      %c0_48 = arith.constant 0 : index
      %c0_49 = arith.constant 0 : index
      %138 = vector.load %arg17[%c0_48, %c0_49] : memref<16x6xf32, #tpu.memory_space<vmem>>, vector<16x6xf32>
      %c0_50 = arith.constant 0 : index
      %c0_51 = arith.constant 0 : index
      %139 = vector.load %arg16[%c0_50, %c0_51] : memref<16x1xf32, #tpu.memory_space<vmem>>, vector<16x1xf32>
      %140 = tpu.reciprocal %139 {approx = true} : vector<16x1xf32> -> vector<16x1xf32>
      %141 = vector.broadcast %140 : vector<16x1xf32> to vector<16x6xf32>
      %142 = arith.mulf %138, %141 : vector<16x6xf32>
      %c0_52 = arith.constant 0 : index
      %c0_53 = arith.constant 0 : index
      %143 = vector.load %arg11[%c0_52, %c0_53] : memref<6x128xf32, #tpu.memory_space<vmem>>, vector<6x128xf32>
      %cst_54 = arith.constant dense<0.000000e+00> : vector<16x128xf32>
      %144 = tpu.matmul %142, %143, %cst_54 {dimension_numbers = #tpu.dot_dimension_numbers<[1], [0], [0], [1], [0, 0, 1, 1], [], []>} : vector<16x6xf32>, vector<6x128xf32>, vector<16x128xf32> -> vector<16x128xf32>
      %c0_55 = arith.constant 0 : index
      %c0_56 = arith.constant 0 : index
      %145 = vector.load %arg12[%c0_55, %c0_56] : memref<1x128xf32, #tpu.memory_space<vmem>>, vector<1x128xf32>
      %146 = vector.broadcast %145 : vector<1x128xf32> to vector<16x128xf32>
      %147 = arith.addf %144, %146 : vector<16x128xf32>
      %c0_57 = arith.constant 0 : index
      %c0_58 = arith.constant 0 : index
      %148 = vector.load %arg6[%c0_57, %c0_58] : memref<16x128xf32, #tpu.memory_space<vmem>>, vector<16x128xf32>
      %149 = arith.addf %147, %148 : vector<16x128xf32>
      %cst_59 = arith.constant 0.000000e+00 : f32
      %150 = vector.broadcast %cst_59 : f32 to vector<16x128xf32>
      %151 = arith.cmpf ogt, %149, %150 : vector<16x128xf32>
      %152 = math.exp %149 : vector<16x128xf32>
      %cst_60 = arith.constant 1.000000e+00 : f32
      %153 = vector.broadcast %cst_60 : f32 to vector<16x128xf32>
      %154 = arith.subf %152, %153 : vector<16x128xf32>
      %cst_61 = arith.constant 1.67326319 : f32
      %155 = vector.broadcast %cst_61 : f32 to vector<16x128xf32>
      %156 = arith.mulf %155, %154 : vector<16x128xf32>
      %157 = arith.select %151, %149, %156 : vector<16x128xi1>, vector<16x128xf32>
      %cst_62 = arith.constant 1.05070102 : f32
      %158 = vector.broadcast %cst_62 : f32 to vector<16x128xf32>
      %159 = arith.mulf %158, %157 : vector<16x128xf32>
      %c0_63 = arith.constant 0 : index
      %c0_64 = arith.constant 0 : index
      %160 = vector.load %arg13[%c0_63, %c0_64] : memref<16x128xf32, #tpu.memory_space<vmem>>, vector<16x128xf32>
      tpu.vector_store %arg13[%c0_63, %c0_64], %159 {strides = array<i32>} : memref<16x128xf32, #tpu.memory_space<vmem>>, vector<16x128xf32>,
    } else {
    }
    return
  }
  func.func @transform_0(%arg0: i32, %arg1: i32) -> (i32, i32) {
    %c0_i32 = arith.constant 0 : i32
    %c0_i32_0 = arith.constant 0 : i32
    return %arg0, %c0_i32 : i32, i32
  }
  func.func @transform_1(%arg0: i32, %arg1: i32) -> (i32, i32) {
    %c0_i32 = arith.constant 0 : i32
    %c0_i32_0 = arith.constant 0 : i32
    return %c0_i32, %arg1 : i32, i32
  }
  func.func @transform_2(%arg0: i32, %arg1: i32) -> (i32, i32) {
    %c0_i32 = arith.constant 0 : i32
    %c0_i32_0 = arith.constant 0 : i32
    return %arg1, %c0_i32 : i32, i32
  }
  func.func @transform_3(%arg0: i32, %arg1: i32) -> (i32, i32) {
    %c0_i32 = arith.constant 0 : i32
    return %arg0, %arg1 : i32, i32
  }
  func.func @transform_4(%arg0: i32, %arg1: i32) -> (i32, i32) {
    %c0_i32 = arith.constant 0 : i32
    %c0_i32_0 = arith.constant 0 : i32
    return %arg0, %c0_i32 : i32, i32
  }
  func.func @transform_5(%arg0: i32, %arg1: i32) -> (i32, i32) {
    %c0_i32 = arith.constant 0 : i32
    %c0_i32_0 = arith.constant 0 : i32
    %c0_i32_1 = arith.constant 0 : i32
    return %c0_i32, %c0_i32_0 : i32, i32
  }
  func.func @transform_6(%arg0: i32, %arg1: i32) -> (i32, i32) {
    %c0_i32 = arith.constant 0 : i32
    %c0_i32_0 = arith.constant 0 : i32
    %c0_i32_1 = arith.constant 0 : i32
    return %c0_i32, %c0_i32_0 : i32, i32
  }
  func.func @transform_7(%arg0: i32, %arg1: i32) -> (i32, i32) {
    %c0_i32 = arith.constant 0 : i32
    %c0_i32_0 = arith.constant 0 : i32
    %c0_i32_1 = arith.constant 0 : i32
    return %c0_i32, %c0_i32_0 : i32, i32
  }
  func.func @transform_8(%arg0: i32, %arg1: i32) -> (i32, i32) {
    %c0_i32 = arith.constant 0 : i32
    %c0_i32_0 = arith.constant 0 : i32
    %c0_i32_1 = arith.constant 0 : i32
    return %c0_i32, %c0_i32_0 : i32, i32
  }
  func.func @transform_9(%arg0: i32, %arg1: i32) -> (i32, i32) {
    %c0_i32 = arith.constant 0 : i32
    %c0_i32_0 = arith.constant 0 : i32
    %c0_i32_1 = arith.constant 0 : i32
    return %c0_i32, %c0_i32_0 : i32, i32
  }
  func.func @transform_10(%arg0: i32, %arg1: i32) -> (i32, i32) {
    %c0_i32 = arith.constant 0 : i32
    %c0_i32_0 = arith.constant 0 : i32
    %c0_i32_1 = arith.constant 0 : i32
    return %c0_i32, %c0_i32_0 : i32, i32
  }
  func.func @transform_11(%arg0: i32, %arg1: i32) -> (i32, i32) {
    %c0_i32 = arith.constant 0 : i32
    %c0_i32_0 = arith.constant 0 : i32
    return %arg0, %c0_i32 : i32, i32
  }
}

module attributes {stable_mosaic.version = 11 : i64} {
  func.func @knn_avg_kernel(%arg0: i32, %arg1: i32, %arg2: memref<16x16xbf16, #tpu.memory_space<vmem>>, %arg3: memref<16x6xbf16, #tpu.memory_space<vmem>>, %arg4: memref<6x128xf32, #tpu.memory_space<vmem>>, %arg5: memref<1x128xf32, #tpu.memory_space<vmem>>, %arg6: memref<16x128xf32, #tpu.memory_space<vmem>>, %arg7: memref<16x6xf32, #tpu.memory_space<vmem>>) attributes {dimension_semantics = [#tpu.dimension_semantics<parallel>, #tpu.dimension_semantics<arbitrary>], iteration_bounds = array<i64: 1, 1>, scalar_prefetch = 0 : i64, scratch_operands = 1 : i64, tpu.core_type = #tpu.core_type<tc>, window_params = [{transform_indices = @transform_0, window_bounds = array<i64: 16, 16>}, {transform_indices = @transform_1, window_bounds = array<i64: 16, 6>}, {pipeline_mode = #tpu.pipeline_mode<synchronous>, transform_indices = @transform_2, window_bounds = array<i64: 6, 128>}, {pipeline_mode = #tpu.pipeline_mode<synchronous>, transform_indices = @transform_3, window_bounds = array<i64: 1, 128>}, {transform_indices = @transform_4, window_bounds = array<i64: 16, 128>}]} {
    %c0_i32 = arith.constant 0 : i32
    %0 = arith.cmpi eq, %arg1, %c0_i32 : i32
    %1 = arith.extui %0 : i1 to i32
    %c0_i32_0 = arith.constant 0 : i32
    %2 = arith.cmpi ne, %1, %c0_i32_0 : i32
    scf.if %2 {
      %cst_10 = arith.constant 0.000000e+00 : f32
      %12 = vector.broadcast %cst_10 : f32 to vector<16x6xf32>
      %c0_11 = arith.constant 0 : index
      %c0_12 = arith.constant 0 : index
      %13 = vector.load %arg7[%c0_11, %c0_12] : memref<16x6xf32, #tpu.memory_space<vmem>>, vector<16x6xf32>
      tpu.vector_store %arg7[%c0_11, %c0_12], %12 {strides = array<i32>} : memref<16x6xf32, #tpu.memory_space<vmem>>, vector<16x6xf32>,
    } else {
    }
    %c0 = arith.constant 0 : index
    %c0_1 = arith.constant 0 : index
    %3 = vector.load %arg7[%c0, %c0_1] : memref<16x6xf32, #tpu.memory_space<vmem>>, vector<16x6xf32>
    %c0_2 = arith.constant 0 : index
    %c0_3 = arith.constant 0 : index
    %4 = vector.load %arg2[%c0_2, %c0_3] : memref<16x16xbf16, #tpu.memory_space<vmem>>, vector<16x16xbf16>
    %c0_4 = arith.constant 0 : index
    %c0_5 = arith.constant 0 : index
    %5 = vector.load %arg3[%c0_4, %c0_5] : memref<16x6xbf16, #tpu.memory_space<vmem>>, vector<16x6xbf16>
    %cst = arith.constant dense<0.000000e+00> : vector<16x6xf32>
    %6 = tpu.matmul %4, %5, %cst {dimension_numbers = #tpu.dot_dimension_numbers<[1], [0], [0], [1], [0, 0, 1, 1], [], []>} : vector<16x16xbf16>, vector<16x6xbf16>, vector<16x6xf32> -> vector<16x6xf32>
    %7 = arith.addf %3, %6 : vector<16x6xf32>
    %c0_6 = arith.constant 0 : index
    %c0_7 = arith.constant 0 : index
    %8 = vector.load %arg7[%c0_6, %c0_7] : memref<16x6xf32, #tpu.memory_space<vmem>>, vector<16x6xf32>
    tpu.vector_store %arg7[%c0_6, %c0_7], %7 {strides = array<i32>} : memref<16x6xf32, #tpu.memory_space<vmem>>, vector<16x6xf32>,
    %c0_i32_8 = arith.constant 0 : i32
    %9 = arith.cmpi eq, %arg1, %c0_i32_8 : i32
    %10 = arith.extui %9 : i1 to i32
    %c0_i32_9 = arith.constant 0 : i32
    %11 = arith.cmpi ne, %10, %c0_i32_9 : i32
    scf.if %11 {
      %c0_10 = arith.constant 0 : index
      %c0_11 = arith.constant 0 : index
      %12 = vector.load %arg7[%c0_10, %c0_11] : memref<16x6xf32, #tpu.memory_space<vmem>>, vector<16x6xf32>
      %c0_12 = arith.constant 0 : index
      %c0_13 = arith.constant 0 : index
      %13 = vector.load %arg4[%c0_12, %c0_13] : memref<6x128xf32, #tpu.memory_space<vmem>>, vector<6x128xf32>
      %cst_14 = arith.constant dense<0.000000e+00> : vector<16x128xf32>
      %14 = tpu.matmul %12, %13, %cst_14 {dimension_numbers = #tpu.dot_dimension_numbers<[1], [0], [0], [1], [0, 0, 1, 1], [], []>} : vector<16x6xf32>, vector<6x128xf32>, vector<16x128xf32> -> vector<16x128xf32>
      %c0_15 = arith.constant 0 : index
      %c0_16 = arith.constant 0 : index
      %15 = vector.load %arg5[%c0_15, %c0_16] : memref<1x128xf32, #tpu.memory_space<vmem>>, vector<1x128xf32>
      %16 = vector.broadcast %15 : vector<1x128xf32> to vector<16x128xf32>
      %17 = arith.addf %14, %16 : vector<16x128xf32>
      %c0_17 = arith.constant 0 : index
      %c0_18 = arith.constant 0 : index
      %18 = vector.load %arg6[%c0_17, %c0_18] : memref<16x128xf32, #tpu.memory_space<vmem>>, vector<16x128xf32>
      tpu.vector_store %arg6[%c0_17, %c0_18], %17 {strides = array<i32>} : memref<16x128xf32, #tpu.memory_space<vmem>>, vector<16x128xf32>,
    } else {
    }
    return
  }
  func.func @transform_0(%arg0: i32, %arg1: i32) -> (i32, i32) {
    %c0_i32 = arith.constant 0 : i32
    return %arg0, %arg1 : i32, i32
  }
  func.func @transform_1(%arg0: i32, %arg1: i32) -> (i32, i32) {
    %c0_i32 = arith.constant 0 : i32
    %c0_i32_0 = arith.constant 0 : i32
    return %arg1, %c0_i32 : i32, i32
  }
  func.func @transform_2(%arg0: i32, %arg1: i32) -> (i32, i32) {
    %c0_i32 = arith.constant 0 : i32
    %c0_i32_0 = arith.constant 0 : i32
    %c0_i32_1 = arith.constant 0 : i32
    return %c0_i32, %c0_i32_0 : i32, i32
  }
  func.func @transform_3(%arg0: i32, %arg1: i32) -> (i32, i32) {
    %c0_i32 = arith.constant 0 : i32
    %c0_i32_0 = arith.constant 0 : i32
    %c0_i32_1 = arith.constant 0 : i32
    return %c0_i32, %c0_i32_0 : i32, i32
  }
  func.func @transform_4(%arg0: i32, %arg1: i32) -> (i32, i32) {
    %c0_i32 = arith.constant 0 : i32
    %c0_i32_0 = arith.constant 0 : i32
    return %arg0, %c0_i32 : i32, i32
  }
}

module attributes {stable_mosaic.version = 11 : i64} {
  func.func @kernel(%arg0: i32, %arg1: i32, %arg2: memref<16x6xbf16, #tpu.memory_space<vmem>>, %arg3: memref<8x128xf32, #tpu.memory_space<vmem>>, %arg4: memref<128x8xbf16, #tpu.memory_space<vmem>>, %arg5: memref<16x128xbf16, #tpu.memory_space<vmem>>, %arg6: memref<16x128xf32, #tpu.memory_space<vmem>>, %arg7: memref<6x8xbf16, #tpu.memory_space<vmem>>, %arg8: memref<1x8xf32, #tpu.memory_space<vmem>>, %arg9: memref<1x8xf32, #tpu.memory_space<vmem>>, %arg10: memref<1x1xf32, #tpu.memory_space<vmem>>, %arg11: memref<8x128xf32, #tpu.memory_space<vmem>>, %arg12: memref<1x128xf32, #tpu.memory_space<vmem>>, %arg13: memref<16x128xf32, #tpu.memory_space<vmem>>, %arg14: memref<16x8xf32, #tpu.memory_space<vmem>>, %arg15: memref<16x1xf32, #tpu.memory_space<vmem>>, %arg16: memref<16x1xf32, #tpu.memory_space<vmem>>, %arg17: memref<16x8xf32, #tpu.memory_space<vmem>>) attributes {dimension_semantics = [#tpu.dimension_semantics<parallel>, #tpu.dimension_semantics<arbitrary>], iteration_bounds = array<i64: 1, 1>, scalar_prefetch = 0 : i64, scratch_operands = 4 : i64, tpu.core_type = #tpu.core_type<tc>, window_params = [{transform_indices = @transform_0, window_bounds = array<i64: 16, 6>}, {transform_indices = @transform_1, window_bounds = array<i64: 8, 128>}, {transform_indices = @transform_2, window_bounds = array<i64: 128, 8>}, {transform_indices = @transform_3, window_bounds = array<i64: 16, 128>}, {transform_indices = @transform_4, window_bounds = array<i64: 16, 128>}, {pipeline_mode = #tpu.pipeline_mode<synchronous>, transform_indices = @transform_5, window_bounds = array<i64: 6, 8>}, {pipeline_mode = #tpu.pipeline_mode<synchronous>, transform_indices = @transform_6, window_bounds = array<i64: 1, 8>}, {pipeline_mode = #tpu.pipeline_mode<synchronous>, transform_indices = @transform_7, window_bounds = array<i64: 1, 8>}, {pipeline_mode = #tpu.pipeline_mode<synchronous>, transform_indices = @transform_8, window_bounds = array<i64: 1, 1>}, {pipeline_mode = #tpu.pipeline_mode<synchronous>, transform_indices = @transform_9, window_bounds = array<i64: 8, 128>}, {pipeline_mode = #tpu.pipeline_mode<synchronous>, transform_indices = @transform_10, window_bounds = array<i64: 1, 128>}, {transform_indices = @transform_11, window_bounds = array<i64: 16, 128>}]} {
    %c0_i32 = arith.constant 0 : i32
    %0 = arith.cmpi eq, %arg1, %c0_i32 : i32
    %1 = arith.extui %0 : i1 to i32
    %c0_i32_0 = arith.constant 0 : i32
    %2 = arith.cmpi ne, %1, %c0_i32_0 : i32
    scf.if %2 {
      %c0_48 = arith.constant 0 : index
      %c0_49 = arith.constant 0 : index
      %138 = vector.load %arg2[%c0_48, %c0_49] : memref<16x6xbf16, #tpu.memory_space<vmem>>, vector<16x6xbf16>
      %c0_50 = arith.constant 0 : index
      %c0_51 = arith.constant 0 : index
      %139 = vector.load %arg7[%c0_50, %c0_51] : memref<6x8xbf16, #tpu.memory_space<vmem>>, vector<6x8xbf16>
      %cst_52 = arith.constant dense<0.000000e+00> : vector<16x8xf32>
      %140 = tpu.matmul %138, %139, %cst_52 {dimension_numbers = #tpu.dot_dimension_numbers<[1], [0], [0], [1], [0, 0, 1, 1], [], []>} : vector<16x6xbf16>, vector<6x8xbf16>, vector<16x8xf32> -> vector<16x8xf32>
      %c0_53 = arith.constant 0 : index
      %c0_54 = arith.constant 0 : index
      %141 = vector.load %arg8[%c0_53, %c0_54] : memref<1x8xf32, #tpu.memory_space<vmem>>, vector<1x8xf32>
      %142 = vector.broadcast %141 : vector<1x8xf32> to vector<16x8xf32>
      %143 = arith.addf %140, %142 : vector<16x8xf32>
      %c0_55 = arith.constant 0 : index
      %c0_56 = arith.constant 0 : index
      %144 = vector.load %arg14[%c0_55, %c0_56] : memref<16x8xf32, #tpu.memory_space<vmem>>, vector<16x8xf32>
      tpu.vector_store %arg14[%c0_55, %c0_56], %143 {strides = array<i32>} : memref<16x8xf32, #tpu.memory_space<vmem>>, vector<16x8xf32>,
      %cst_57 = arith.constant -1.000000e+30 : f32
      %145 = vector.broadcast %cst_57 : f32 to vector<16x1xf32>
      %c0_58 = arith.constant 0 : index
      %c0_59 = arith.constant 0 : index
      %146 = vector.load %arg15[%c0_58, %c0_59] : memref<16x1xf32, #tpu.memory_space<vmem>>, vector<16x1xf32>
      tpu.vector_store %arg15[%c0_58, %c0_59], %145 {strides = array<i32>} : memref<16x1xf32, #tpu.memory_space<vmem>>, vector<16x1xf32>,
      %cst_60 = arith.constant 0.000000e+00 : f32
      %147 = vector.broadcast %cst_60 : f32 to vector<16x1xf32>
      %c0_61 = arith.constant 0 : index
      %c0_62 = arith.constant 0 : index
      %148 = vector.load %arg16[%c0_61, %c0_62] : memref<16x1xf32, #tpu.memory_space<vmem>>, vector<16x1xf32>
      tpu.vector_store %arg16[%c0_61, %c0_62], %147 {strides = array<i32>} : memref<16x1xf32, #tpu.memory_space<vmem>>, vector<16x1xf32>,
      %cst_63 = arith.constant 0.000000e+00 : f32
      %149 = vector.broadcast %cst_63 : f32 to vector<16x8xf32>
      %c0_64 = arith.constant 0 : index
      %c0_65 = arith.constant 0 : index
      %150 = vector.load %arg17[%c0_64, %c0_65] : memref<16x8xf32, #tpu.memory_space<vmem>>, vector<16x8xf32>
      tpu.vector_store %arg17[%c0_64, %c0_65], %149 {strides = array<i32>} : memref<16x8xf32, #tpu.memory_space<vmem>>, vector<16x8xf32>,
    } else {
    }
    %c0 = arith.constant 0 : index
    %c0_1 = arith.constant 0 : index
    %3 = vector.load %arg14[%c0, %c0_1] : memref<16x8xf32, #tpu.memory_space<vmem>>, vector<16x8xf32>
    %c0_2 = arith.constant 0 : index
    %c0_3 = arith.constant 0 : index
    %4 = vector.load %arg3[%c0_2, %c0_3] : memref<8x128xf32, #tpu.memory_space<vmem>>, vector<8x128xf32>
    %cst = arith.constant 0.000000e+00 : f32
    %5 = vector.broadcast %cst : f32 to vector<16x128xf32>
    %6 = vector.extract_strided_slice %3 {offsets = [0, 0], sizes = [16, 1], strides = [1, 1]} : vector<16x8xf32> to vector<16x1xf32>
    %7 = vector.extract_strided_slice %4 {offsets = [0, 0], sizes = [1, 128], strides = [1, 1]} : vector<8x128xf32> to vector<1x128xf32>
    %8 = vector.broadcast %6 : vector<16x1xf32> to vector<16x128xf32>
    %9 = vector.broadcast %7 : vector<1x128xf32> to vector<16x128xf32>
    %10 = arith.addf %8, %9 : vector<16x128xf32>
    %cst_4 = arith.constant 0.000000e+00 : f32
    %11 = vector.broadcast %cst_4 : f32 to vector<16x128xf32>
    %12 = arith.maximumf %10, %11 : vector<16x128xf32>
    %c0_5 = arith.constant 0 : index
    %c0_6 = arith.constant 0 : index
    %13 = vector.load %arg9[%c0_5, %c0_6] : memref<1x8xf32, #tpu.memory_space<vmem>>, vector<1x1xf32>
    %14 = vector.broadcast %13 : vector<1x1xf32> to vector<16x128xf32>
    %15 = arith.mulf %12, %14 : vector<16x128xf32>
    %16 = arith.addf %5, %15 : vector<16x128xf32>
    %17 = vector.extract_strided_slice %3 {offsets = [0, 1], sizes = [16, 1], strides = [1, 1]} : vector<16x8xf32> to vector<16x1xf32>
    %18 = vector.extract_strided_slice %4 {offsets = [1, 0], sizes = [1, 128], strides = [1, 1]} : vector<8x128xf32> to vector<1x128xf32>
    %19 = vector.broadcast %17 : vector<16x1xf32> to vector<16x128xf32>
    %20 = vector.broadcast %18 : vector<1x128xf32> to vector<16x128xf32>
    %21 = arith.addf %19, %20 : vector<16x128xf32>
    %cst_7 = arith.constant 0.000000e+00 : f32
    %22 = vector.broadcast %cst_7 : f32 to vector<16x128xf32>
    %23 = arith.maximumf %21, %22 : vector<16x128xf32>
    %c0_8 = arith.constant 0 : index
    %c1 = arith.constant 1 : index
    %24 = vector.load %arg9[%c0_8, %c1] : memref<1x8xf32, #tpu.memory_space<vmem>>, vector<1x1xf32>
    %25 = vector.broadcast %24 : vector<1x1xf32> to vector<16x128xf32>
    %26 = arith.mulf %23, %25 : vector<16x128xf32>
    %27 = arith.addf %16, %26 : vector<16x128xf32>
    %28 = vector.extract_strided_slice %3 {offsets = [0, 2], sizes = [16, 1], strides = [1, 1]} : vector<16x8xf32> to vector<16x1xf32>
    %29 = vector.extract_strided_slice %4 {offsets = [2, 0], sizes = [1, 128], strides = [1, 1]} : vector<8x128xf32> to vector<1x128xf32>
    %30 = vector.broadcast %28 : vector<16x1xf32> to vector<16x128xf32>
    %31 = vector.broadcast %29 : vector<1x128xf32> to vector<16x128xf32>
    %32 = arith.addf %30, %31 : vector<16x128xf32>
    %cst_9 = arith.constant 0.000000e+00 : f32
    %33 = vector.broadcast %cst_9 : f32 to vector<16x128xf32>
    %34 = arith.maximumf %32, %33 : vector<16x128xf32>
    %c0_10 = arith.constant 0 : index
    %c2 = arith.constant 2 : index
    %35 = vector.load %arg9[%c0_10, %c2] : memref<1x8xf32, #tpu.memory_space<vmem>>, vector<1x1xf32>
    %36 = vector.broadcast %35 : vector<1x1xf32> to vector<16x128xf32>
    %37 = arith.mulf %34, %36 : vector<16x128xf32>
    %38 = arith.addf %27, %37 : vector<16x128xf32>
    %39 = vector.extract_strided_slice %3 {offsets = [0, 3], sizes = [16, 1], strides = [1, 1]} : vector<16x8xf32> to vector<16x1xf32>
    %40 = vector.extract_strided_slice %4 {offsets = [3, 0], sizes = [1, 128], strides = [1, 1]} : vector<8x128xf32> to vector<1x128xf32>
    %41 = vector.broadcast %39 : vector<16x1xf32> to vector<16x128xf32>
    %42 = vector.broadcast %40 : vector<1x128xf32> to vector<16x128xf32>
    %43 = arith.addf %41, %42 : vector<16x128xf32>
    %cst_11 = arith.constant 0.000000e+00 : f32
    %44 = vector.broadcast %cst_11 : f32 to vector<16x128xf32>
    %45 = arith.maximumf %43, %44 : vector<16x128xf32>
    %c0_12 = arith.constant 0 : index
    %c3 = arith.constant 3 : index
    %46 = vector.load %arg9[%c0_12, %c3] : memref<1x8xf32, #tpu.memory_space<vmem>>, vector<1x1xf32>
    %47 = vector.broadcast %46 : vector<1x1xf32> to vector<16x128xf32>
    %48 = arith.mulf %45, %47 : vector<16x128xf32>
    %49 = arith.addf %38, %48 : vector<16x128xf32>
    %50 = vector.extract_strided_slice %3 {offsets = [0, 4], sizes = [16, 1], strides = [1, 1]} : vector<16x8xf32> to vector<16x1xf32>
    %51 = vector.extract_strided_slice %4 {offsets = [4, 0], sizes = [1, 128], strides = [1, 1]} : vector<8x128xf32> to vector<1x128xf32>
    %52 = vector.broadcast %50 : vector<16x1xf32> to vector<16x128xf32>
    %53 = vector.broadcast %51 : vector<1x128xf32> to vector<16x128xf32>
    %54 = arith.addf %52, %53 : vector<16x128xf32>
    %cst_13 = arith.constant 0.000000e+00 : f32
    %55 = vector.broadcast %cst_13 : f32 to vector<16x128xf32>
    %56 = arith.maximumf %54, %55 : vector<16x128xf32>
    %c0_14 = arith.constant 0 : index
    %c4 = arith.constant 4 : index
    %57 = vector.load %arg9[%c0_14, %c4] : memref<1x8xf32, #tpu.memory_space<vmem>>, vector<1x1xf32>
    %58 = vector.broadcast %57 : vector<1x1xf32> to vector<16x128xf32>
    %59 = arith.mulf %56, %58 : vector<16x128xf32>
    %60 = arith.addf %49, %59 : vector<16x128xf32>
    %61 = vector.extract_strided_slice %3 {offsets = [0, 5], sizes = [16, 1], strides = [1, 1]} : vector<16x8xf32> to vector<16x1xf32>
    %62 = vector.extract_strided_slice %4 {offsets = [5, 0], sizes = [1, 128], strides = [1, 1]} : vector<8x128xf32> to vector<1x128xf32>
    %63 = vector.broadcast %61 : vector<16x1xf32> to vector<16x128xf32>
    %64 = vector.broadcast %62 : vector<1x128xf32> to vector<16x128xf32>
    %65 = arith.addf %63, %64 : vector<16x128xf32>
    %cst_15 = arith.constant 0.000000e+00 : f32
    %66 = vector.broadcast %cst_15 : f32 to vector<16x128xf32>
    %67 = arith.maximumf %65, %66 : vector<16x128xf32>
    %c0_16 = arith.constant 0 : index
    %c5 = arith.constant 5 : index
    %68 = vector.load %arg9[%c0_16, %c5] : memref<1x8xf32, #tpu.memory_space<vmem>>, vector<1x1xf32>
    %69 = vector.broadcast %68 : vector<1x1xf32> to vector<16x128xf32>
    %70 = arith.mulf %67, %69 : vector<16x128xf32>
    %71 = arith.addf %60, %70 : vector<16x128xf32>
    %72 = vector.extract_strided_slice %3 {offsets = [0, 6], sizes = [16, 1], strides = [1, 1]} : vector<16x8xf32> to vector<16x1xf32>
    %73 = vector.extract_strided_slice %4 {offsets = [6, 0], sizes = [1, 128], strides = [1, 1]} : vector<8x128xf32> to vector<1x128xf32>
    %74 = vector.broadcast %72 : vector<16x1xf32> to vector<16x128xf32>
    %75 = vector.broadcast %73 : vector<1x128xf32> to vector<16x128xf32>
    %76 = arith.addf %74, %75 : vector<16x128xf32>
    %cst_17 = arith.constant 0.000000e+00 : f32
    %77 = vector.broadcast %cst_17 : f32 to vector<16x128xf32>
    %78 = arith.maximumf %76, %77 : vector<16x128xf32>
    %c0_18 = arith.constant 0 : index
    %c6 = arith.constant 6 : index
    %79 = vector.load %arg9[%c0_18, %c6] : memref<1x8xf32, #tpu.memory_space<vmem>>, vector<1x1xf32>
    %80 = vector.broadcast %79 : vector<1x1xf32> to vector<16x128xf32>
    %81 = arith.mulf %78, %80 : vector<16x128xf32>
    %82 = arith.addf %71, %81 : vector<16x128xf32>
    %83 = vector.extract_strided_slice %3 {offsets = [0, 7], sizes = [16, 1], strides = [1, 1]} : vector<16x8xf32> to vector<16x1xf32>
    %84 = vector.extract_strided_slice %4 {offsets = [7, 0], sizes = [1, 128], strides = [1, 1]} : vector<8x128xf32> to vector<1x128xf32>
    %85 = vector.broadcast %83 : vector<16x1xf32> to vector<16x128xf32>
    %86 = vector.broadcast %84 : vector<1x128xf32> to vector<16x128xf32>
    %87 = arith.addf %85, %86 : vector<16x128xf32>
    %cst_19 = arith.constant 0.000000e+00 : f32
    %88 = vector.broadcast %cst_19 : f32 to vector<16x128xf32>
    %89 = arith.maximumf %87, %88 : vector<16x128xf32>
    %c0_20 = arith.constant 0 : index
    %c7 = arith.constant 7 : index
    %90 = vector.load %arg9[%c0_20, %c7] : memref<1x8xf32, #tpu.memory_space<vmem>>, vector<1x1xf32>
    %91 = vector.broadcast %90 : vector<1x1xf32> to vector<16x128xf32>
    %92 = arith.mulf %89, %91 : vector<16x128xf32>
    %93 = arith.addf %82, %92 : vector<16x128xf32>
    %c0_21 = arith.constant 0 : index
    %c0_22 = arith.constant 0 : index
    %94 = vector.load %arg10[%c0_21, %c0_22] : memref<1x1xf32, #tpu.memory_space<vmem>>, vector<1x1xf32>
    %95 = vector.broadcast %94 : vector<1x1xf32> to vector<16x128xf32>
    %96 = arith.addf %93, %95 : vector<16x128xf32>
    %cst_23 = arith.constant 0.000000e+00 : f32
    %97 = vector.broadcast %cst_23 : f32 to vector<16x128xf32>
    %98 = arith.maximumf %96, %97 : vector<16x128xf32>
    %c0_24 = arith.constant 0 : index
    %c0_25 = arith.constant 0 : index
    %99 = vector.load %arg5[%c0_24, %c0_25] : memref<16x128xbf16, #tpu.memory_space<vmem>>, vector<16x128xbf16>
    %100 = arith.extf %99 : vector<16x128xbf16> to vector<16x128xf32>
    %101 = arith.mulf %98, %100 : vector<16x128xf32>
    %c128_i32 = arith.constant 128 : i32
    %102 = arith.muli %arg1, %c128_i32 : i32
    %103 = tpu.iota {dimensions = array<i32: 1>} : vector<16x128xi32>
    %104 = vector.broadcast %102 : i32 to vector<16x128xi32>
    %105 = arith.addi %104, %103 : vector<16x128xi32>
    %c16_i32 = arith.constant 16 : i32
    %106 = vector.broadcast %c16_i32 : i32 to vector<16x128xi32>
    %107 = arith.cmpi slt, %105, %106 : vector<16x128xi32>
    %cst_26 = arith.constant -1.000000e+30 : f32
    %108 = vector.broadcast %cst_26 : f32 to vector<16x128xf32>
    %109 = arith.select %107, %101, %108 : vector<16x128xi1>, vector<16x128xf32>
    %cst_27 = arith.constant dense<0xFF800000> : vector<16xf32>
    %110 = vector.multi_reduction <maximumf>, %109, %cst_27 [1] : vector<16x128xf32> to vector<16xf32>
    %111 = vector.shape_cast %110 : vector<16xf32> to vector<16x1xf32>
    %c0_28 = arith.constant 0 : index
    %c0_29 = arith.constant 0 : index
    %112 = vector.load %arg15[%c0_28, %c0_29] : memref<16x1xf32, #tpu.memory_space<vmem>>, vector<16x1xf32>
    %113 = arith.maximumf %112, %111 : vector<16x1xf32>
    %c0_30 = arith.constant 0 : index
    %c0_31 = arith.constant 0 : index
    %114 = vector.load %arg15[%c0_30, %c0_31] : memref<16x1xf32, #tpu.memory_space<vmem>>, vector<16x1xf32>
    %115 = arith.subf %114, %113 : vector<16x1xf32>
    %116 = math.exp %115 : vector<16x1xf32>
    %117 = vector.broadcast %113 : vector<16x1xf32> to vector<16x128xf32>
    %118 = arith.subf %109, %117 : vector<16x128xf32>
    %119 = math.exp %118 : vector<16x128xf32>
    %c0_32 = arith.constant 0 : index
    %c0_33 = arith.constant 0 : index
    %120 = vector.load %arg16[%c0_32, %c0_33] : memref<16x1xf32, #tpu.memory_space<vmem>>, vector<16x1xf32>
    %121 = arith.mulf %116, %120 : vector<16x1xf32>
    %cst_34 = arith.constant dense<0.000000e+00> : vector<16xf32>
    %122 = vector.multi_reduction <add>, %119, %cst_34 [1] : vector<16x128xf32> to vector<16xf32>
    %123 = vector.shape_cast %122 : vector<16xf32> to vector<16x1xf32>
    %124 = arith.addf %121, %123 : vector<16x1xf32>
    %c0_35 = arith.constant 0 : index
    %c0_36 = arith.constant 0 : index
    %125 = vector.load %arg16[%c0_35, %c0_36] : memref<16x1xf32, #tpu.memory_space<vmem>>, vector<16x1xf32>
    tpu.vector_store %arg16[%c0_35, %c0_36], %124 {strides = array<i32>} : memref<16x1xf32, #tpu.memory_space<vmem>>, vector<16x1xf32>,
    %c0_37 = arith.constant 0 : index
    %c0_38 = arith.constant 0 : index
    %126 = vector.load %arg17[%c0_37, %c0_38] : memref<16x8xf32, #tpu.memory_space<vmem>>, vector<16x8xf32>
    %127 = vector.broadcast %116 : vector<16x1xf32> to vector<16x8xf32>
    %128 = arith.mulf %127, %126 : vector<16x8xf32>
    %129 = arith.truncf %119 : vector<16x128xf32> to vector<16x128xbf16>
    %c0_39 = arith.constant 0 : index
    %c0_40 = arith.constant 0 : index
    %130 = vector.load %arg4[%c0_39, %c0_40] : memref<128x8xbf16, #tpu.memory_space<vmem>>, vector<128x8xbf16>
    %cst_41 = arith.constant dense<0.000000e+00> : vector<16x8xf32>
    %131 = tpu.matmul %129, %130, %cst_41 {dimension_numbers = #tpu.dot_dimension_numbers<[1], [0], [0], [1], [0, 0, 1, 1], [], []>} : vector<16x128xbf16>, vector<128x8xbf16>, vector<16x8xf32> -> vector<16x8xf32>
    %132 = arith.addf %128, %131 : vector<16x8xf32>
    %c0_42 = arith.constant 0 : index
    %c0_43 = arith.constant 0 : index
    %133 = vector.load %arg17[%c0_42, %c0_43] : memref<16x8xf32, #tpu.memory_space<vmem>>, vector<16x8xf32>
    tpu.vector_store %arg17[%c0_42, %c0_43], %132 {strides = array<i32>} : memref<16x8xf32, #tpu.memory_space<vmem>>, vector<16x8xf32>,
    %c0_44 = arith.constant 0 : index
    %c0_45 = arith.constant 0 : index
    %134 = vector.load %arg15[%c0_44, %c0_45] : memref<16x1xf32, #tpu.memory_space<vmem>>, vector<16x1xf32>
    tpu.vector_store %arg15[%c0_44, %c0_45], %113 {strides = array<i32>} : memref<16x1xf32, #tpu.memory_space<vmem>>, vector<16x1xf32>,
    %c0_i32_46 = arith.constant 0 : i32
    %135 = arith.cmpi eq, %arg1, %c0_i32_46 : i32
    %136 = arith.extui %135 : i1 to i32
    %c0_i32_47 = arith.constant 0 : i32
    %137 = arith.cmpi ne, %136, %c0_i32_47 : i32
    scf.if %137 {
      %c0_48 = arith.constant 0 : index
      %c0_49 = arith.constant 0 : index
      %138 = vector.load %arg17[%c0_48, %c0_49] : memref<16x8xf32, #tpu.memory_space<vmem>>, vector<16x8xf32>
      %c0_50 = arith.constant 0 : index
      %c0_51 = arith.constant 0 : index
      %139 = vector.load %arg16[%c0_50, %c0_51] : memref<16x1xf32, #tpu.memory_space<vmem>>, vector<16x1xf32>
      %140 = tpu.reciprocal %139 {approx = true} : vector<16x1xf32> -> vector<16x1xf32>
      %141 = vector.broadcast %140 : vector<16x1xf32> to vector<16x8xf32>
      %142 = arith.mulf %138, %141 : vector<16x8xf32>
      %c0_52 = arith.constant 0 : index
      %c0_53 = arith.constant 0 : index
      %143 = vector.load %arg11[%c0_52, %c0_53] : memref<8x128xf32, #tpu.memory_space<vmem>>, vector<8x128xf32>
      %cst_54 = arith.constant dense<0.000000e+00> : vector<16x128xf32>
      %144 = tpu.matmul %142, %143, %cst_54 {dimension_numbers = #tpu.dot_dimension_numbers<[1], [0], [0], [1], [0, 0, 1, 1], [], []>} : vector<16x8xf32>, vector<8x128xf32>, vector<16x128xf32> -> vector<16x128xf32>
      %c0_55 = arith.constant 0 : index
      %c0_56 = arith.constant 0 : index
      %145 = vector.load %arg12[%c0_55, %c0_56] : memref<1x128xf32, #tpu.memory_space<vmem>>, vector<1x128xf32>
      %146 = vector.broadcast %145 : vector<1x128xf32> to vector<16x128xf32>
      %147 = arith.addf %144, %146 : vector<16x128xf32>
      %c0_57 = arith.constant 0 : index
      %c0_58 = arith.constant 0 : index
      %148 = vector.load %arg6[%c0_57, %c0_58] : memref<16x128xf32, #tpu.memory_space<vmem>>, vector<16x128xf32>
      %149 = arith.addf %147, %148 : vector<16x128xf32>
      %cst_59 = arith.constant 0.000000e+00 : f32
      %150 = vector.broadcast %cst_59 : f32 to vector<16x128xf32>
      %151 = arith.cmpf ogt, %149, %150 : vector<16x128xf32>
      %152 = math.exp %149 : vector<16x128xf32>
      %cst_60 = arith.constant 1.000000e+00 : f32
      %153 = vector.broadcast %cst_60 : f32 to vector<16x128xf32>
      %154 = arith.subf %152, %153 : vector<16x128xf32>
      %cst_61 = arith.constant 1.67326319 : f32
      %155 = vector.broadcast %cst_61 : f32 to vector<16x128xf32>
      %156 = arith.mulf %155, %154 : vector<16x128xf32>
      %157 = arith.select %151, %149, %156 : vector<16x128xi1>, vector<16x128xf32>
      %cst_62 = arith.constant 1.05070102 : f32
      %158 = vector.broadcast %cst_62 : f32 to vector<16x128xf32>
      %159 = arith.mulf %158, %157 : vector<16x128xf32>
      %c0_63 = arith.constant 0 : index
      %c0_64 = arith.constant 0 : index
      %160 = vector.load %arg13[%c0_63, %c0_64] : memref<16x128xf32, #tpu.memory_space<vmem>>, vector<16x128xf32>
      tpu.vector_store %arg13[%c0_63, %c0_64], %159 {strides = array<i32>} : memref<16x128xf32, #tpu.memory_space<vmem>>, vector<16x128xf32>,
    } else {
    }
    return
  }
  func.func @transform_0(%arg0: i32, %arg1: i32) -> (i32, i32) {
    %c0_i32 = arith.constant 0 : i32
    %c0_i32_0 = arith.constant 0 : i32
    return %arg0, %c0_i32 : i32, i32
  }
  func.func @transform_1(%arg0: i32, %arg1: i32) -> (i32, i32) {
    %c0_i32 = arith.constant 0 : i32
    %c0_i32_0 = arith.constant 0 : i32
    return %c0_i32, %arg1 : i32, i32
  }
  func.func @transform_2(%arg0: i32, %arg1: i32) -> (i32, i32) {
    %c0_i32 = arith.constant 0 : i32
    %c0_i32_0 = arith.constant 0 : i32
    return %arg1, %c0_i32 : i32, i32
  }
  func.func @transform_3(%arg0: i32, %arg1: i32) -> (i32, i32) {
    %c0_i32 = arith.constant 0 : i32
    return %arg0, %arg1 : i32, i32
  }
  func.func @transform_4(%arg0: i32, %arg1: i32) -> (i32, i32) {
    %c0_i32 = arith.constant 0 : i32
    %c0_i32_0 = arith.constant 0 : i32
    return %arg0, %c0_i32 : i32, i32
  }
  func.func @transform_5(%arg0: i32, %arg1: i32) -> (i32, i32) {
    %c0_i32 = arith.constant 0 : i32
    %c0_i32_0 = arith.constant 0 : i32
    %c0_i32_1 = arith.constant 0 : i32
    return %c0_i32, %c0_i32_0 : i32, i32
  }
  func.func @transform_6(%arg0: i32, %arg1: i32) -> (i32, i32) {
    %c0_i32 = arith.constant 0 : i32
    %c0_i32_0 = arith.constant 0 : i32
    %c0_i32_1 = arith.constant 0 : i32
    return %c0_i32, %c0_i32_0 : i32, i32
  }
  func.func @transform_7(%arg0: i32, %arg1: i32) -> (i32, i32) {
    %c0_i32 = arith.constant 0 : i32
    %c0_i32_0 = arith.constant 0 : i32
    %c0_i32_1 = arith.constant 0 : i32
    return %c0_i32, %c0_i32_0 : i32, i32
  }
  func.func @transform_8(%arg0: i32, %arg1: i32) -> (i32, i32) {
    %c0_i32 = arith.constant 0 : i32
    %c0_i32_0 = arith.constant 0 : i32
    %c0_i32_1 = arith.constant 0 : i32
    return %c0_i32, %c0_i32_0 : i32, i32
  }
  func.func @transform_9(%arg0: i32, %arg1: i32) -> (i32, i32) {
    %c0_i32 = arith.constant 0 : i32
    %c0_i32_0 = arith.constant 0 : i32
    %c0_i32_1 = arith.constant 0 : i32
    return %c0_i32, %c0_i32_0 : i32, i32
  }
  func.func @transform_10(%arg0: i32, %arg1: i32) -> (i32, i32) {
    %c0_i32 = arith.constant 0 : i32
    %c0_i32_0 = arith.constant 0 : i32
    %c0_i32_1 = arith.constant 0 : i32
    return %c0_i32, %c0_i32_0 : i32, i32
  }
  func.func @transform_11(%arg0: i32, %arg1: i32) -> (i32, i32) {
    %c0_i32 = arith.constant 0 : i32
    %c0_i32_0 = arith.constant 0 : i32
    return %arg0, %c0_i32 : i32, i32
  }
}

module attributes {stable_mosaic.version = 11 : i64} {
  func.func @kernel(%arg0: memref<128x8xf32, #tpu.memory_space<vmem>>, %arg1: memref<128x8xf32, #tpu.memory_space<vmem>>, %arg2: memref<1x8xf32, #tpu.memory_space<vmem>>, %arg3: memref<8x128xf32, #tpu.memory_space<vmem>>, %arg4: memref<8x1xf32, #tpu.memory_space<vmem>>, %arg5: memref<8x8xf32, #tpu.memory_space<vmem>>, %arg6: memref<8x1xf32, #tpu.memory_space<vmem>>, %arg7: memref<8x1xf32, #tpu.memory_space<vmem>>, %arg8: memref<1x1xf32, #tpu.memory_space<vmem>>, %arg9: memref<1x1xf32, #tpu.memory_space<vmem>>, %arg10: memref<1x8xf32, #tpu.memory_space<vmem>>) attributes {dimension_semantics = [], scalar_prefetch = 0 : i64, scratch_operands = 0 : i64, tpu.core_type = #tpu.core_type<tc>} {
    %c0 = arith.constant 0 : index
    %c0_0 = arith.constant 0 : index
    %0 = vector.load %arg0[%c0, %c0_0] : memref<128x8xf32, #tpu.memory_space<vmem>>, vector<128x8xf32>
    %c0_1 = arith.constant 0 : index
    %c0_2 = arith.constant 0 : index
    %1 = vector.load %arg1[%c0_1, %c0_2] : memref<128x8xf32, #tpu.memory_space<vmem>>, vector<128x8xf32>
    %2 = arith.mulf %0, %1 : vector<128x8xf32>
    %c0_3 = arith.constant 0 : index
    %c0_4 = arith.constant 0 : index
    %3 = vector.load %arg3[%c0_3, %c0_4] : memref<8x128xf32, #tpu.memory_space<vmem>>, vector<8x128xf32>
    %c0_5 = arith.constant 0 : index
    %c0_6 = arith.constant 0 : index
    %4 = vector.load %arg4[%c0_5, %c0_6] : memref<8x1xf32, #tpu.memory_space<vmem>>, vector<8x1xf32>
    %cst = arith.constant dense<0.000000e+00> : vector<8x8xf32>
    %5 = tpu.matmul %3, %2, %cst {dimension_numbers = #tpu.dot_dimension_numbers<[1], [0], [0], [1], [0, 0, 1, 1], [], []>} : vector<8x128xf32>, vector<128x8xf32>, vector<8x8xf32> -> vector<8x8xf32>
    %6 = vector.broadcast %4 : vector<8x1xf32> to vector<8x8xf32>
    %7 = arith.addf %5, %6 : vector<8x8xf32>
    %cst_7 = arith.constant 0.000000e+00 : f32
    %8 = vector.broadcast %cst_7 : f32 to vector<8x8xf32>
    %9 = arith.cmpf ogt, %7, %8 : vector<8x8xf32>
    %10 = math.exp %7 : vector<8x8xf32>
    %cst_8 = arith.constant 1.000000e+00 : f32
    %11 = vector.broadcast %cst_8 : f32 to vector<8x8xf32>
    %12 = arith.subf %10, %11 : vector<8x8xf32>
    %cst_9 = arith.constant 1.67326319 : f32
    %13 = vector.broadcast %cst_9 : f32 to vector<8x8xf32>
    %14 = arith.mulf %13, %12 : vector<8x8xf32>
    %15 = arith.select %9, %7, %14 : vector<8x8xi1>, vector<8x8xf32>
    %cst_10 = arith.constant 1.05070102 : f32
    %16 = vector.broadcast %cst_10 : f32 to vector<8x8xf32>
    %17 = arith.mulf %16, %15 : vector<8x8xf32>
    %c0_11 = arith.constant 0 : index
    %c0_12 = arith.constant 0 : index
    %18 = vector.load %arg5[%c0_11, %c0_12] : memref<8x8xf32, #tpu.memory_space<vmem>>, vector<8x8xf32>
    %c0_13 = arith.constant 0 : index
    %c0_14 = arith.constant 0 : index
    %19 = vector.load %arg6[%c0_13, %c0_14] : memref<8x1xf32, #tpu.memory_space<vmem>>, vector<8x1xf32>
    %cst_15 = arith.constant dense<0.000000e+00> : vector<8x8xf32>
    %20 = tpu.matmul %18, %17, %cst_15 {dimension_numbers = #tpu.dot_dimension_numbers<[1], [0], [0], [1], [0, 0, 1, 1], [], []>} : vector<8x8xf32>, vector<8x8xf32>, vector<8x8xf32> -> vector<8x8xf32>
    %21 = vector.broadcast %19 : vector<8x1xf32> to vector<8x8xf32>
    %22 = arith.addf %20, %21 : vector<8x8xf32>
    %cst_16 = arith.constant 0.000000e+00 : f32
    %23 = vector.broadcast %cst_16 : f32 to vector<8x8xf32>
    %24 = arith.cmpf ogt, %22, %23 : vector<8x8xf32>
    %25 = math.exp %22 : vector<8x8xf32>
    %cst_17 = arith.constant 1.000000e+00 : f32
    %26 = vector.broadcast %cst_17 : f32 to vector<8x8xf32>
    %27 = arith.subf %25, %26 : vector<8x8xf32>
    %cst_18 = arith.constant 1.67326319 : f32
    %28 = vector.broadcast %cst_18 : f32 to vector<8x8xf32>
    %29 = arith.mulf %28, %27 : vector<8x8xf32>
    %30 = arith.select %24, %22, %29 : vector<8x8xi1>, vector<8x8xf32>
    %cst_19 = arith.constant 1.05070102 : f32
    %31 = vector.broadcast %cst_19 : f32 to vector<8x8xf32>
    %32 = arith.mulf %31, %30 : vector<8x8xf32>
    %c0_20 = arith.constant 0 : index
    %c0_21 = arith.constant 0 : index
    %33 = vector.load %arg7[%c0_20, %c0_21] : memref<8x1xf32, #tpu.memory_space<vmem>>, vector<8x1xf32>
    %34 = vector.broadcast %33 : vector<8x1xf32> to vector<8x8xf32>
    %35 = arith.mulf %32, %34 : vector<8x8xf32>
    %cst_22 = arith.constant dense<0.000000e+00> : vector<8xf32>
    %36 = vector.multi_reduction <add>, %35, %cst_22 [0] : vector<8x8xf32> to vector<8xf32>
    %37 = vector.shape_cast %36 : vector<8xf32> to vector<1x8xf32>
    %c0_23 = arith.constant 0 : index
    %c0_24 = arith.constant 0 : index
    %38 = vector.load %arg8[%c0_23, %c0_24] : memref<1x1xf32, #tpu.memory_space<vmem>>, vector<1x1xf32>
    %39 = vector.broadcast %38 : vector<1x1xf32> to vector<1x8xf32>
    %40 = arith.addf %37, %39 : vector<1x8xf32>
    %c0_25 = arith.constant 0 : index
    %c0_26 = arith.constant 0 : index
    %41 = vector.load %arg2[%c0_25, %c0_26] : memref<1x8xf32, #tpu.memory_space<vmem>>, vector<1x8xf32>
    %cst_27 = arith.constant 0.000000e+00 : f32
    %42 = vector.broadcast %cst_27 : f32 to vector<1x8xf32>
    %43 = arith.maximumf %40, %42 : vector<1x8xf32>
    %44 = arith.mulf %40, %41 : vector<1x8xf32>
    %45 = arith.subf %43, %44 : vector<1x8xf32>
    %46 = math.absf %40 : vector<1x8xf32>
    %cst_28 = arith.constant 0.000000e+00 : f32
    %47 = vector.broadcast %cst_28 : f32 to vector<1x8xf32>
    %48 = arith.subf %47, %46 : vector<1x8xf32>
    %49 = math.exp %48 : vector<1x8xf32>
    %50 = math.log1p %49 : vector<1x8xf32>
    %51 = arith.addf %45, %50 : vector<1x8xf32>
    %52 = vector.shape_cast %51 : vector<1x8xf32> to vector<1x1x8xf32>
    %cst_29 = arith.constant dense<0.000000e+00> : vector<1xf32>
    %53 = vector.multi_reduction <add>, %52, %cst_29 [1, 2] : vector<1x1x8xf32> to vector<1xf32>
    %54 = vector.shape_cast %53 : vector<1xf32> to vector<1x1x1xf32>
    %55 = vector.extract %54[0, 0, 0] : f32 from vector<1x1x1xf32>
    %56 = vector.broadcast %55 : f32 to vector<1x1xf32>
    %cst_30 = arith.constant 8.000000e+00 : f32
    %57 = vector.broadcast %cst_30 : f32 to vector<1x1xf32>
    %58 = arith.divf %56, %57 : vector<1x1xf32>
    %c0_31 = arith.constant 0 : index
    %c0_32 = arith.constant 0 : index
    %59 = vector.load %arg9[%c0_31, %c0_32] : memref<1x1xf32, #tpu.memory_space<vmem>>, vector<1x1xf32>
    tpu.vector_store %arg9[%c0_31, %c0_32], %58 {strides = array<i32>} : memref<1x1xf32, #tpu.memory_space<vmem>>, vector<1x1xf32>,
    %60 = arith.negf %40 : vector<1x8xf32>
    %61 = math.exp %60 : vector<1x8xf32>
    %cst_33 = arith.constant 1.000000e+00 : f32
    %62 = vector.broadcast %cst_33 : f32 to vector<1x8xf32>
    %63 = arith.addf %62, %61 : vector<1x8xf32>
    %64 = arith.divf %62, %63 : vector<1x8xf32>
    %c0_34 = arith.constant 0 : index
    %c0_35 = arith.constant 0 : index
    %65 = vector.load %arg10[%c0_34, %c0_35] : memref<1x8xf32, #tpu.memory_space<vmem>>, vector<1x8xf32>
    tpu.vector_store %arg10[%c0_34, %c0_35], %64 {strides = array<i32>} : memref<1x8xf32, #tpu.memory_space<vmem>>, vector<1x8xf32>,
    return
  }
}

</mosaic_0001>

<bundles_post_ra>
// kernel: model_forward.5
= control target key start
LH: loop header
LB: loop body
LE: loop exit
PB: predicated region body
PF: predicated region fallthrough
CT: control target
= control target key end

     0   :  { %vm22_vm0 = vcmask 64512   ;;  %v125_v1 = vmov 0.0   ;;  %vm42_vm1 = vcmask 130048   ;;  %s175_s1 = inlined_call_operand.vmem [shape: bf16[16,8], index: 1, kind: input, shape index: {}]   ;;  %s176_s0 = inlined_call_operand.vmem [shape: bf16[16,16], index: 0, kind: input, shape index: {}]   ;;  %s177_s3 = inlined_call_operand.vmem [shape: f32[1,128], index: 3, kind: input, shape index: {}]   ;;  %s178_s2 = inlined_call_operand.vmem [shape: f32[8,128], index: 2, kind: input, shape index: {}]   ;;  %s179_s4 = inlined_call_operand.vmem [shape: f32[16,128], index: 4, kind: output, shape index: {}]  }
   0x1   :  { %v122_v0 = vld [vmem:[%s175_s1] sm:$0xff]  ;;  %23 = vst.msk [vmem:[#allocation2] sm:$0xff] %vm22_vm0, %v125_v1 }
   0x2   :  { %v121_v2 = vld [vmem:[%s176_s0] sm:$0xff]  ;;  %24 = vst.msk [vmem:[#allocation2 + $0x8] sm:$0xff] %vm22_vm0, %v125_v1  ;;  %53 = vmatpush.bf16.msra.mxu0 %v122_v0 }
   0x3   :  { %v70_v3 = vld [vmem:[%s178_s2] sm:$0xff] }
   0x4   :  { %96 = vmatpush.msra.mxu1 %v70_v3  ;;  %v124_v12 = vld [vmem:[%s177_s3] ss:$0 sm:$0xff] }
   0x5   :  { %118 = vmatmul.msk.bf16.vlgmr.msra.gmra.mxu0 %vm42_vm1, %v121_v2 }
   0x8   :  { %v25_v4 = vld [vmem:[#allocation2] sm:$0xff] }
   0x9   :  { %v26_v7 = vld [vmem:[#allocation2 + $0x8] sm:$0xff] }
  0x82   :  { %v55_v5 = vpop.f32.mrf.mxu0 }
  0x83   :  { %v60_v6 = vadd.f32 %v55_v5, %v25_v4 }
  0x85   :  { %63 = vst.msk [vmem:[#allocation2] sm:$0xff] %vm22_vm0, %v60_v6 }
  0x8a   :  { %v57_v8 = vpop.f32.mrf.mxu0 }
  0x8b   :  { %v61_v9 = vadd.f32 %v57_v8, %v26_v7 }
  0x8c   :  { %v68_v10 = vld [vmem:[#allocation2] sm:$0xff] }
  0x8d   :  { %64 = vst.msk [vmem:[#allocation2 + $0x8] sm:$0xff] %vm22_vm0, %v61_v9  ;;  %119 = vmatmul.msk.f32.vlgmr.msra.gmra.mxu1 %vm22_vm0, %v68_v10 }
  0x94   :  { %v69_v11 = vld [vmem:[#allocation2 + $0x8] sm:$0xff] }
  0x95   :  { %120 = vmatmul.msk.f32.gmra.mxu1 %vm22_vm0, %v69_v11 }
 0x10a   :  { %v98_v13 = vpop.f32.mrf.mxu1 }
 0x10b   :  { %v99_v14 = vadd.f32 %v124_v12, %v98_v13 }
 0x10d   :  { %104 = vst [vmem:[%s179_s4] sm:$0xff] %v99_v14 }
 0x112   :  { %v101_v15 = vpop.f32.mrf.mxu1 }
 0x113   :  { %v102_v16 = vadd.f32 %v124_v12, %v101_v15 }
 0x115   :  { %105 = vst [vmem:[%s179_s4 + $0x8] sm:$0xff] %v102_v16 }

// kernel: model_forward.7
= control target key start
LH: loop header
LB: loop body
LE: loop exit
PB: predicated region body
PF: predicated region fallthrough
CT: control target
= control target key end

     0   :  { %vm22_vm0 = vcmask 48128   ;;  %v130_v1 = vmov 0.0   ;;  %vm42_vm1 = vcmask 130048   ;;  %vm81_vm2 = vcmask 1045504   ;;  %s180_s1 = inlined_call_operand.vmem [shape: bf16[16,6], index: 1, kind: input, shape index: {}]   ;;  %s181_s0 = inlined_call_operand.vmem [shape: bf16[16,16], index: 0, kind: input, shape index: {}]   ;;  %s182_s3 = inlined_call_operand.vmem [shape: f32[1,128], index: 3, kind: input, shape index: {}]   ;;  %s183_s2 = inlined_call_operand.vmem [shape: f32[6,128], index: 2, kind: input, shape index: {}]   ;;  %s184_s4 = inlined_call_operand.vmem [shape: f32[16,128], index: 4, kind: output, shape index: {}]  }
   0x1   :  { %v127_v0 = vld [vmem:[%s180_s1] sm:$0xff]  ;;  %23 = vst.msk [vmem:[#allocation2] sm:$0xff] %vm22_vm0, %v130_v1 }
   0x2   :  { %v126_v2 = vld [vmem:[%s181_s0] sm:$0xff]  ;;  %24 = vst.msk [vmem:[#allocation2 + $0x8] sm:$0xff] %vm22_vm0, %v130_v1  ;;  %53 = vmatpush.bf16.msra.mxu0 %v127_v0 }
   0x3   :  { %v70_v3 = vld [vmem:[%s183_s2] sm:$0x3f] }
   0x4   :  { %123 = vmatpush.msk.msra.mxu1 %vm81_vm2, %v70_v3  ;;  %v129_v12 = vld [vmem:[%s182_s3] ss:$0 sm:$0xff] }
   0x5   :  { %122 = vmatmul.msk.bf16.vlgmr.msra.gmra.mxu0 %vm42_vm1, %v126_v2 }
   0x8   :  { %v25_v4 = vld [vmem:[#allocation2] sm:$0xff] }
   0x9   :  { %v26_v7 = vld [vmem:[#allocation2 + $0x8] sm:$0xff] }
  0x82   :  { %v55_v5 = vpop.f32.mrf.mxu0 }
  0x83   :  { %v60_v6 = vadd.f32 %v55_v5, %v25_v4 }
  0x85   :  { %63 = vst.msk [vmem:[#allocation2] sm:$0xff] %vm22_vm0, %v60_v6 }
  0x8a   :  { %v57_v8 = vpop.f32.mrf.mxu0 }
  0x8b   :  { %v61_v9 = vadd.f32 %v57_v8, %v26_v7 }
  0x8c   :  { %v68_v10 = vld [vmem:[#allocation2] sm:$0xff] }
  0x8d   :  { %64 = vst.msk [vmem:[#allocation2 + $0x8] sm:$0xff] %vm22_vm0, %v61_v9  ;;  %124 = vmatmul.msk.f32.vlgmr.msra.gmra.mxu1 %vm22_vm0, %v68_v10 }
  0x94   :  { %v69_v11 = vld [vmem:[#allocation2 + $0x8] sm:$0xff] }
  0x95   :  { %125 = vmatmul.msk.f32.gmra.mxu1 %vm22_vm0, %v69_v11 }
 0x10a   :  { %v102_v13 = vpop.f32.mrf.mxu1 }
 0x10b   :  { %v103_v14 = vadd.f32 %v129_v12, %v102_v13 }
 0x10d   :  { %108 = vst [vmem:[%s184_s4] sm:$0xff] %v103_v14 }
 0x112   :  { %v105_v15 = vpop.f32.mrf.mxu1 }
 0x113   :  { %v106_v16 = vadd.f32 %v129_v12, %v105_v15 }
 0x115   :  { %109 = vst [vmem:[%s184_s4 + $0x8] sm:$0xff] %v106_v16 }

// kernel: model_forward.6
= control target key start
LH: loop header
LB: loop body
LE: loop exit
PB: predicated region body
PF: predicated region fallthrough
CT: control target
= control target key end

     0   :  { %vm61_vm0 = vcmask 1043456   ;;  %v627_v2 = vmov 1   ;;  %v628_v5 = vmov 3   ;;  %vm57_vm1 = vcmask 64512   ;;  %s812_s5 = inlined_call_operand.vmem [shape: bf16[8,8], index: 5, kind: input, shape index: {}]   ;;  %s813_s0 = inlined_call_operand.vmem [shape: bf16[16,8], index: 0, kind: input, shape index: {}]   ;;  %s814_s7 = inlined_call_operand.vmem [shape: f32[1,8], index: 7, kind: input, shape index: {}]   ;;  %s815_s6 = inlined_call_operand.vmem [shape: f32[1,8], index: 6, kind: input, shape index: {}]   ;;  %s816_s8 = inlined_call_operand.<no memory space> [shape: f32[1,1], index: 8, kind: input, shape index: {}]   ;;  %s817_s1 = inlined_call_operand.vmem [shape: f32[8,128], index: 1, kind: input, shape index: {}]   ;;  %s818_s3 = inlined_call_operand.vmem [shape: bf16[16,128], index: 3, kind: input, shape index: {}]   ;;  %s819_s2 = inlined_call_operand.vmem [shape: bf16[128,6], index: 2, kind: input, shape index: {}]   ;;  %s820_s10 = inlined_call_operand.vmem [shape: f32[1,128], index: 10, kind: input, shape index: {}]   ;;  %s821_s9 = inlined_call_operand.vmem [shape: f32[6,128], index: 9, kind: input, shape index: {}]   ;;  %s822_s4 = inlined_call_operand.vmem [shape: f32[16,128], index: 4, kind: input, shape index: {}]   ;;  %s823_s11 = inlined_call_operand.vmem [shape: f32[16,128], index: 11, kind: output, shape index: {}]  }
   0x1   :  { %v47_v0 = vld [vmem:[%s812_s5] sm:$0xf]  ;;  %581 = vset.pattern.permute.xlu1 %v627_v2  ;;  %583 = vset.pattern.permute.xlu2 %v628_v5  ;;  %v629_v6 = vmov 5   ;;  %v630_v7 = vmov 2   ;;  %v631_v8 = vmov 4   ;;  %v632_v9 = vmov 0  }
   0x2   :  { %v558_v1 = vld [vmem:[%s813_s0] sm:$0xff]  ;;  %v63_v3 = vsel %vm61_vm0, %v47_v0, 0  ;;  %585 = vset.pattern.permute.xlu0 %v629_v6  ;;  %v633_v16 = vmov 6   ;;  %v634_v17 = vmov 7   ;;  %v16_v19 = vstv %s816_s8 }
   0x3   :  { %v706_v4 = vld [vmem:[%s814_s7] ss:$0 sm:$0xff]  ;;  %72 = vmatpush.bf16.msra.mxu0 %v63_v3  ;;  %17 = vst [vmem:[#allocation6] sm:$0x1] %v16_v19  ;;  %vm81_vm2 = vcmask 7168   ;;  %vm86_vm4 = vcmask 48128  }
   0x4   :  { %132 = vperm.xlu1 %581, %v706_v4   ;;  %174 = vperm.xlu2 %583, %v706_v4   ;;  %v608_v10 = vld [vmem:[%s815_s6] ss:$0 sm:$0xff]  ;;  %v635_v59 = vmov -1e+30   ;;  %vm465_vm5 = vcmask 1045504  }
   0x5   :  { %216 = vperm.xlu0 %585, %v706_v4   ;;  %v736_v35 = vld [vmem:[%s817_s1] sm:$0xff]  ;;  %83 = vst.msk [vmem:[#allocation3 + $0x8] sm:$0xff] %vm81_vm2, %v635_v59 }
   0x6   :  { %520 = vmatmul.msk.bf16.vlgmr.msra.gmra.mxu0 %vm57_vm1, %v558_v1  ;;  %v126_v36 = vperm.slane %v736_v35, 1  ;;  %v102_v37 = vperm.slane %v736_v35, 0  ;;  %v147_v42 = vperm.slane %v736_v35, 2  ;;  %v168_v49 = vperm.slane %v736_v35, 3  ;;  %82 = vst.msk [vmem:[#allocation3] sm:$0xff] %vm81_vm2, %v635_v59 }
   0x7   :  { %v189_v57 = vperm.slane %v736_v35, 4  ;;  %v210_v0 = vperm.slane %v736_v35, 5 }
   0xa   :  { %v609_v20 = vld [vmem:[#allocation6] ss:$0 sm:$0xff] }
   0xc   :  { %582 = vset.pattern.permute.xlu1 %v630_v7  ;;  %584 = vset.pattern.permute.xlu2 %v631_v8 }
   0xd   :  { %153 = vperm.xlu1 %582, %v706_v4   ;;  %586 = vset.pattern.permute.xlu0 %v632_v9 }
   0xe   :  { %195 = vperm.xlu2 %584, %v706_v4   ;;  %111 = vperm.xlu0 %586, %v706_v4  }
  0x15   :  { %587 = vset.pattern.permute.xlu1 %v627_v2 }
  0x16   :  { %588 = vset.pattern.permute.xlu2 %v630_v7 }
  0x5e   :  { %v725_v21 = vpop.permute.xlu2 %174 }
  0x68   :  { %v729_v24 = vpop.permute.xlu2 %195 }
  0x76   :  { %v133_v22 = vpop.permute.xlu1 %132 }
  0x77   :  { %v727_v23 = vpop.permute.xlu0 %216 }
  0x7f   :  { %v154_v25 = vpop.permute.xlu1 %153 }
  0x80   :  { %v112_v26 = vpop.permute.xlu0 %111 }
  0x83   :  { %v74_v11 = vpop.f32.mrf.mxu0 }
  0x84   :  { %v75_v12 = vadd.f32 %v608_v10, %v74_v11 }
  0x86   :  { %79 = vst.msk [vmem:[#allocation2] sm:$0xff] %vm57_vm1, %v75_v12 }
  0x8b   :  { %v76_v13 = vpop.f32.mrf.mxu0 }
  0x8c   :  { %v77_v14 = vadd.f32 %v608_v10, %v76_v13 }
  0x8d   :  { %v89_v15 = vld [vmem:[#allocation2] sm:$0xff] }
  0x8e   :  { %80 = vst.msk [vmem:[#allocation2 + $0x8] sm:$0xff] %vm57_vm1, %v77_v14  ;;  %140 = vperm.xlu2 %588, %v89_v15   ;;  %119 = vperm.xlu1 %587, %v89_v15  }
  0x8f   :  { %94 = vperm.xlu0 %586, %v89_v15  }
  0x95   :  { %v90_v18 = vld [vmem:[#allocation2 + $0x8] sm:$0xff] }
  0x96   :  { %589 = vset.pattern.permute.xlu2 %v628_v5  ;;  %592 = vset.pattern.permute.xlu1 %v633_v16 }
  0x97   :  { %591 = vset.pattern.permute.xlu0 %v629_v6  ;;  %161 = vperm.xlu2 %589, %v89_v15  }
  0x98   :  { %224 = vperm.xlu1 %592, %v89_v15   ;;  %203 = vperm.xlu0 %591, %v89_v15  }
  0x9f   :  { %590 = vset.pattern.permute.xlu2 %v631_v8 }
  0xa0   :  { %593 = vset.pattern.permute.xlu1 %v634_v17  ;;  %594 = vset.pattern.permute.xlu0 %v632_v9 }
  0xa1   :  { %182 = vperm.xlu2 %590, %v89_v15   ;;  %245 = vperm.xlu1 %593, %v89_v15  }
  0xa2   :  { %99 = vperm.xlu0 %594, %v90_v18  }
  0xa9   :  { %596 = vset.pattern.permute.xlu2 %v630_v7  ;;  %595 = vset.pattern.permute.xlu1 %v627_v2 }
  0xaa   :  { %597 = vset.pattern.permute.xlu0 %v628_v5  ;;  %144 = vperm.xlu2 %596, %v90_v18  }
  0xab   :  { %123 = vperm.xlu1 %595, %v90_v18   ;;  %165 = vperm.xlu0 %597, %v90_v18  }
  0xb2   :  { %602 = vset.pattern.permute.xlu2 %v633_v16 }
  0xb3   :  { %599 = vset.pattern.permute.xlu1 %v631_v8  ;;  %598 = vset.pattern.permute.xlu0 %v633_v16  ;;  %v231_v8 = vperm.slane %v736_v35, 6 }
  0xb4   :  { %228 = vperm.xlu2 %602, %v90_v18   ;;  %186 = vperm.xlu1 %599, %v90_v18  }
  0xb5   :  { %237 = vperm.xlu0 %598, %v706_v4  }
  0xbc   :  { %603 = vset.pattern.permute.xlu2 %v634_v17  ;;  %600 = vset.pattern.permute.xlu1 %v629_v6 }
  0xbd   :  { %249 = vperm.xlu2 %603, %v90_v18   ;;  %207 = vperm.xlu1 %600, %v90_v18  }
  0xbe   :  { %605 = vset.pattern.permute.xlu0 %v632_v9 }
  0xc5   :  { %601 = vset.pattern.permute.xlu1 %v634_v17  ;;  %604 = vset.pattern.permute.xlu2 %v632_v9 }
  0xc6   :  { %258 = vperm.xlu1 %601, %v706_v4   ;;  %269 = vperm.xlu2 %604, %v609_v20  }
  0xce   :  { %606 = vset.pattern.permute.xlu1 %v632_v9 }
  0xe8   :  { %v141_v27 = vpop.permute.xlu2 %140 }
  0xe9   :  { %v148_v48 = vadd.f32 %v147_v42, %v141_v27 }
  0xeb   :  { %v150_v55 = vmax.f32 %v148_v48, 0.0 }
  0xed   :  { %v156_v5 = vmul.f32 %v154_v25, %v150_v55 }
  0xf1   :  { %v162_v30 = vpop.permute.xlu2 %161 }
  0xf2   :  { %v169_v56 = vadd.f32 %v168_v49, %v162_v30 }
  0xf4   :  { %v171_v6 = vmax.f32 %v169_v56, 0.0 }
  0xf6   :  { %v177_v15 = vmul.f32 %v725_v21, %v171_v6  ;;  %v564_v6 = vld [vmem:[%s819_s2 + $0x28] sm:$0xff] }
  0xfb   :  { %v183_v33 = vpop.permute.xlu2 %182 }
  0xfc   :  { %v190_v7 = vadd.f32 %v189_v57, %v183_v33 }
  0xfe   :  { %v192_v16 = vmax.f32 %v190_v7, 0.0  ;;  %v295_v7 = vld [vmem:[#allocation3 + $0x8] sm:$0xff] }
 0x100   :  { %v120_v28 = vpop.permute.xlu1 %119 }
 0x101   :  { %v95_v29 = vpop.permute.xlu0 %94  ;;  %v127_v38 = vadd.f32 %v126_v36, %v120_v28 }
 0x102   :  { %v103_v39 = vadd.f32 %v102_v37, %v95_v29 }
 0x103   :  { %v129_v45 = vmax.f32 %v127_v38, 0.0 }
 0x104   :  { %v145_v41 = vpop.permute.xlu2 %144  ;;  %v105_v46 = vmax.f32 %v103_v39, 0.0 }
 0x105   :  { %v135_v51 = vmul.f32 %v133_v22, %v129_v45  ;;  %v149_v53 = vadd.f32 %v147_v42, %v145_v41 }
 0x106   :  { %v114_v52 = vmul.f32 %v112_v26, %v105_v46 }
 0x107   :  { %v151_v1 = vmax.f32 %v149_v53, 0.0 }
 0x108   :  { %v137_v63 = vadd.f32 %v135_v51, %v114_v52 }
 0x109   :  { %v157_v12 = vmul.f32 %v154_v25, %v151_v1  ;;  %v198_v25 = vmul.f32 %v729_v24, %v192_v16 }
 0x10a   :  { %v225_v31 = vpop.permute.xlu1 %224  ;;  %v204_v32 = vpop.permute.xlu0 %203  ;;  %v158_v10 = vadd.f32 %v156_v5, %v137_v63  ;;  %v565_v5 = vld [vmem:[%s819_s2 + $0x30] sm:$0xff] }
 0x10b   :  { %v211_v11 = vadd.f32 %v210_v0, %v204_v32  ;;  %v232_v17 = vadd.f32 %v231_v8, %v225_v31 }
 0x10c   :  { %v179_v19 = vadd.f32 %v177_v15, %v158_v10 }
 0x10d   :  { %v213_v20 = vmax.f32 %v211_v11, 0.0  ;;  %v234_v33 = vmax.f32 %v232_v17, 0.0  ;;  %v563_v17 = vld [vmem:[%s819_s2 + $0x20] sm:$0xff] }
 0x10e   :  { %v229_v60 = vpop.permute.xlu2 %228  ;;  %v200_v31 = vadd.f32 %v198_v25, %v179_v19  ;;  %v561_v19 = vld [vmem:[%s819_s2 + $0x10] sm:$0xff] }
 0x10f   :  { %v233_v27 = vadd.f32 %v231_v8, %v229_v60  ;;  %v219_v39 = vmul.f32 %v727_v23, %v213_v20  ;;  %v294_v8 = vld [vmem:[#allocation3] sm:$0xff]  ;;  %v560_v20 = vld [vmem:[%s819_s2 + $0x8] sm:$0xff] }
 0x111   :  { %v235_v41 = vmax.f32 %v233_v27, 0.0  ;;  %v221_v46 = vadd.f32 %v219_v39, %v200_v31 }
 0x113   :  { %v731_v34 = vpop.permute.xlu1 %245 }
 0x114   :  { %v100_v40 = vpop.permute.xlu0 %99 }
 0x115   :  { %v104_v47 = vadd.f32 %v102_v37, %v100_v40 }
 0x117   :  { %v106_v54 = vmax.f32 %v104_v47, 0.0  ;;  %v250_v28 = vpop.permute.xlu2 %249 }
 0x119   :  { %v115_v2 = vmul.f32 %v112_v26, %v106_v54 }
 0x11d   :  { %v124_v43 = vpop.permute.xlu1 %123  ;;  %v166_v58 = vpop.permute.xlu0 %165 }
 0x11e   :  { %v128_v44 = vadd.f32 %v126_v36, %v124_v43  ;;  %v170_v3 = vadd.f32 %v168_v49, %v166_v58 }
 0x120   :  { %v130_v50 = vmax.f32 %v128_v44, 0.0  ;;  %v172_v13 = vmax.f32 %v170_v3, 0.0  ;;  %v270_v54 = vpop.permute.xlu2 %269  ;;  %v636_v3 = vmov 0.0  }
 0x121   :  { %84 = vst.msk [vmem:[#allocation4] sm:$0xff] %vm81_vm2, %v636_v3 }
 0x122   :  { %v136_v61 = vmul.f32 %v133_v22, %v130_v50  ;;  %v252_v22 = vperm.slane %v736_v35, 7  ;;  %v178_v29 = vmul.f32 %v725_v21, %v172_v13  ;;  %v283_v50 = vlaneseq  ;;  %85 = vst.msk [vmem:[#allocation4 + $0x8] sm:$0xff] %vm81_vm2, %v636_v3 }
 0x123   :  { %87 = vst.msk [vmem:[#allocation5] sm:$0xff] %vm86_vm4, %v636_v3 }
 0x124   :  { %v138_v9 = vadd.f32 %v136_v61, %v115_v2  ;;  %v253_v40 = vadd.f32 %v252_v22, %v731_v34  ;;  %v254_v35 = vadd.f32 %v252_v22, %v250_v28  ;;  %v568_v34 = vld [vmem:[%s818_s3] sm:$0xff]   ;;  %88 = vst.msk [vmem:[#allocation5 + $0x8] sm:$0xff] %vm86_vm4, %v636_v3 }
 0x125   :  { %v570_v59 = vunpack.c.h.bf16 %v568_v34  ;;  %v569_v60 = vunpack.c.l.bf16 %v568_v34  ;;  %v559_v22 = vld [vmem:[%s819_s2] sm:$0xff] }
 0x126   :  { %v187_v62 = vpop.permute.xlu1 %186  ;;  %v159_v18 = vadd.f32 %v157_v12, %v138_v9  ;;  %v255_v47 = vmax.f32 %v253_v40, 0.0 }
 0x127   :  { %v191_v4 = vadd.f32 %v189_v57, %v187_v62  ;;  %v238_v37 = vpop.permute.xlu0 %237 }
 0x128   :  { %v180_v36 = vadd.f32 %v178_v29, %v159_v18  ;;  %v240_v21 = vmul.f32 %v238_v37, %v234_v33  ;;  %v241_v44 = vmul.f32 %v238_v37, %v235_v41  ;;  %v562_v18 = vld [vmem:[%s819_s2 + $0x18] sm:$0xff]  ;;  %v320_v31 = vld [vmem:[#allocation4] sm:$0xff] }
 0x129   :  { %v193_v14 = vmax.f32 %v191_v4, 0.0  ;;  %v566_v4 = vld [vmem:[%s819_s2 + $0x38] sm:$0xff]  ;;  %v321_v41 = vld [vmem:[#allocation4 + $0x8] sm:$0xff] }
 0x12a   :  { %v242_v51 = vadd.f32 %v240_v21, %v221_v46  ;;  %412 = vmatpush.bf16.msra.mxu1 %v566_v4 }
 0x12b   :  { %v199_v30 = vmul.f32 %v729_v24, %v193_v14  ;;  %v256_v24 = vmax.f32 %v254_v35, 0.0 }
 0x12d   :  { %v201_v42 = vadd.f32 %v199_v30, %v180_v36 }
 0x12e   :  { %413 = vmatpush.bf16.msra.mxu1 %v565_v5  ;;  %v493_v5 = vld [vmem:[%s822_s4 + $0x8] sm:$0xff] }
 0x12f   :  { %v208_v26 = vpop.permute.xlu1 %207 }
 0x130   :  { %v212_v32 = vadd.f32 %v210_v0, %v208_v26 }
 0x132   :  { %v214_v38 = vmax.f32 %v212_v32, 0.0  ;;  %414 = vmatpush.bf16.msra.mxu1 %v564_v6 }
 0x134   :  { %v220_v43 = vmul.f32 %v727_v23, %v214_v38  ;;  %v284_v23 = vand.u32 127, %v283_v50 }
 0x136   :  { %v222_v45 = vadd.f32 %v220_v43, %v201_v42  ;;  %vm287_vm3 = vcmp.lt.s32.totalorder %v284_v23, 12  ;;  %415 = vmatpush.bf16.msra.mxu1 %v563_v17 }
 0x138   :  { %v259_v48 = vpop.permute.xlu1 %258  ;;  %v243_v49 = vadd.f32 %v241_v44, %v222_v45  ;;  %v333_v45 = vld [vmem:[#allocation5] sm:$0xff] }
 0x139   :  { %v261_v52 = vmul.f32 %v259_v48, %v255_v47  ;;  %v262_v53 = vmul.f32 %v259_v48, %v256_v24 }
 0x13a   :  { %416 = vmatpush.bf16.msra.mxu1 %v562_v18 }
 0x13b   :  { %v263_v55 = vadd.f32 %v261_v52, %v242_v51  ;;  %v264_v56 = vadd.f32 %v262_v53, %v243_v49  ;;  %v334_v51 = vld [vmem:[#allocation5 + $0x8] sm:$0xff] }
 0x13d   :  { %v272_v57 = vadd.f32 %v270_v54, %v263_v55  ;;  %v273_v58 = vadd.f32 %v270_v54, %v264_v56  ;;  %v454_v56 = vld [vmem:[%s821_s9] sm:$0x3f] }
 0x13e   :  { %417 = vmatpush.bf16.msra.mxu1 %v561_v19  ;;  %553 = vmatpush.msk.msra.mxu2 %vm465_vm5, %v454_v56 }
 0x13f   :  { %v274_v61 = vmax.f32 %v272_v57, 0.0  ;;  %v275_v62 = vmax.f32 %v273_v58, 0.0 }
 0x141   :  { %v281_v63 = vmul.f32 %v570_v59, %v275_v62  ;;  %v280_v0 = vmul.f32 %v569_v60, %v274_v61  ;;  %v610_v62 = vld [vmem:[%s820_s10] ss:$0 sm:$0xff] }
 0x142   :  { %418 = vmatpush.bf16.msra.mxu1 %v560_v20 }
 0x143   :  { %v289_v1 = vsel %vm287_vm3, %v281_v63, -1e+30  ;;  %v288_v2 = vsel %vm287_vm3, %v280_v0, -1e+30  ;;  %v492_v0 = vld [vmem:[%s822_s4] sm:$0xff] }
 0x144   :  { %292 = vmax.xlane.f32.xlu2 %v289_v1  ;;  %290 = vmax.xlane.f32.xlu1 %v288_v2 }
 0x146   :  { %419 = vmatpush.bf16.msra.mxu1 %v559_v22 }
 0x1b7   :  { %v293_v9 = vpop.xlane.xlu2 %292  ;;  %v291_v10 = vpop.xlane.xlu1 %290 }
 0x1b8   :  { %v297_v11 = vmax.f32 %v295_v7, %v293_v9  ;;  %v296_v12 = vmax.f32 %v294_v8, %v291_v10 }
 0x1ba   :  { %v299_v13 = vsub.f32 %v295_v7, %v297_v11  ;;  %432 = vst.msk [vmem:[#allocation3 + $0x8] sm:$0xff] %vm81_vm2, %v297_v11  ;;  %v298_v14 = vsub.f32 %v294_v8, %v296_v12  ;;  %306 = vperm.xlu0 %605, %v296_v12  }
 0x1bb   :  { %431 = vst.msk [vmem:[#allocation3] sm:$0xff] %vm81_vm2, %v296_v12 }
 0x1bc   :  { %v300_v15 = vmul.f32 1.442695, %v298_v14  ;;  %v302_v37 = vmul.f32 1.442695, %v299_v13 }
 0x1be   :  { %611 = vpow2.f32 %v300_v15 }
 0x1c2   :  { %311 = vperm.xlu0 %605, %v297_v11  }
 0x1c4   :  { %v612_v16 = vpop.eup %611 }
 0x1c5   :  { %337 = vperm.xlu1 %606, %v612_v16   ;;  %v322_v39 = vmul.f32 %v612_v16, %v320_v31 }
 0x22c   :  { %v307_v26 = vpop.permute.xlu0 %306 }
 0x22d   :  { %v314_v27 = vsub.f32 %v288_v2, %v307_v26 }
 0x22f   :  { %v316_v28 = vmul.f32 1.442695, %v314_v27 }
 0x231   :  { %613 = vpow2.f32 %v316_v28 }
 0x234   :  { %v312_v29 = vpop.permute.xlu0 %311 }
 0x235   :  { %v315_v30 = vsub.f32 %v289_v1, %v312_v29 }
 0x237   :  { %v614_v32 = vpop.eup %613  ;;  %v318_v25 = vmul.f32 1.442695, %v315_v30  ;;  %v338_v46 = vpop.permute.xlu1 %337 }
 0x238   :  { %324 = vadd.xlane.f32.xlu0 %v614_v32  ;;  %v345_v48 = vmul.f32 %v338_v46, %v333_v45 }
 0x239   :  { %615 = vpow2.f32 %v318_v25 }
 0x23a   :  { %617 = vpow2.f32 %v302_v37 }
 0x23f   :  { %v616_v33 = vpop.eup %615 }
 0x240   :  { %326 = vadd.xlane.f32.xlu2 %v616_v33  ;;  %v347_v36 = vpack.c.bf16 %v616_v33, %v614_v32  ;;  %v618_v38 = vpop.eup %617 }
 0x241   :  { %v323_v42 = vmul.f32 %v618_v38, %v321_v41 }
 0x242   :  { %420 = vmatmul.bf16.vlgmr.msra.gmra.mxu1 %v347_v36 }
 0x258   :  { %342 = vperm.xlu2 %604, %v618_v38  }
 0x2ab   :  { %v325_v40 = vpop.xlane.xlu0 %324 }
 0x2ac   :  { %v328_v35 = vadd.f32 %v325_v40, %v322_v39 }
 0x2ae   :  { %331 = vst.msk [vmem:[#allocation4] sm:$0xff] %vm81_vm2, %v328_v35 }
 0x2b3   :  { %v327_v43 = vpop.xlane.xlu2 %326 }
 0x2b4   :  { %v329_v21 = vadd.f32 %v327_v43, %v323_v42 }
 0x2b5   :  { %v438_v44 = vld [vmem:[#allocation4] sm:$0xff] }
 0x2b6   :  { %332 = vst.msk [vmem:[#allocation4 + $0x8] sm:$0xff] %vm81_vm2, %v329_v21  ;;  %619 = vrcp.f32 %v438_v44 }
 0x2bb   :  { %v343_v52 = vpop.permute.xlu2 %342 }
 0x2bc   :  { %v620_v47 = vpop.eup %619  ;;  %v346_v54 = vmul.f32 %v343_v52, %v334_v51 }
 0x2bd   :  { %444 = vperm.xlu1 %606, %v620_v47   ;;  %v439_v24 = vld [vmem:[#allocation4 + $0x8] sm:$0xff] }
 0x2be   :  { %621 = vrcp.f32 %v439_v24 }
 0x2bf   :  { %v421_v49 = vpop.f32.mrf.mxu1 }
 0x2c0   :  { %v426_v50 = vadd.f32 %v421_v49, %v345_v48 }
 0x2c2   :  { %429 = vst.msk [vmem:[#allocation5] sm:$0xff] %vm86_vm4, %v426_v50 }
 0x2c4   :  { %v622_v53 = vpop.eup %621 }
 0x2c5   :  { %449 = vperm.xlu2 %604, %v622_v53  }
 0x2c7   :  { %v423_v34 = vpop.f32.mrf.mxu1 }
 0x2c8   :  { %v427_v55 = vadd.f32 %v423_v34, %v346_v54 }
 0x2c9   :  { %v436_v23 = vld [vmem:[#allocation5] sm:$0xff] }
 0x2ca   :  { %430 = vst.msk [vmem:[#allocation5 + $0x8] sm:$0xff] %vm86_vm4, %v427_v55 }
 0x2d1   :  { %v437_v60 = vld [vmem:[#allocation5 + $0x8] sm:$0xff] }
 0x31f   :  { %v450_v59 = vpop.permute.xlu2 %449 }
 0x320   :  { %v453_v61 = vmul.f32 %v450_v59, %v437_v60 }
 0x32f   :  { %v445_v57 = vpop.permute.xlu1 %444 }
 0x330   :  { %v452_v58 = vmul.f32 %v445_v57, %v436_v23 }
 0x332   :  { %554 = vmatmul.msk.f32.vlgmr.msra.gmra.mxu2 %vm86_vm4, %v452_v58 }
 0x33a   :  { %555 = vmatmul.msk.f32.gmra.mxu2 %vm86_vm4, %v453_v61 }
 0x3b5   :  { %v486_v63 = vpop.f32.mrf.mxu2 }
 0x3b6   :  { %v487_v1 = vadd.f32 %v610_v62, %v486_v63 }
 0x3b8   :  { %v494_v2 = vadd.f32 %v492_v0, %v487_v1 }
 0x3ba   :  { %v498_v3 = vmul.f32 1.442695, %v494_v2  ;;  %vm496_vm6 = vcmp.gt.f32.partialorder %v494_v2, 0.0 }
 0x3bc   :  { %623 = vpow2.f32 %v498_v3 }
 0x3bd   :  { %v489_v4 = vpop.f32.mrf.mxu2 }
 0x3be   :  { %v490_v6 = vadd.f32 %v610_v62, %v489_v4 }
 0x3c0   :  { %v495_v7 = vadd.f32 %v493_v5, %v490_v6 }
 0x3c2   :  { %v624_v8 = vpop.eup %623  ;;  %v500_v9 = vmul.f32 1.442695, %v495_v7  ;;  %vm497_vm7 = vcmp.gt.f32.partialorder %v495_v7, 0.0 }
 0x3c3   :  { %v556_v10 = vadd.f32 -1.0, %v624_v8 }
 0x3c4   :  { %625 = vpow2.f32 %v500_v9 }
 0x3c5   :  { %v504_v11 = vmul.f32 1.6732632, %v556_v10 }
 0x3c7   :  { %v506_v12 = vsel %vm496_vm6, %v494_v2, %v504_v11 }
 0x3c8   :  { %v508_v13 = vmul.f32 1.050701, %v506_v12 }
 0x3ca   :  { %v626_v14 = vpop.eup %625  ;;  %510 = vst [vmem:[%s823_s11] sm:$0xff] %v508_v13 }
 0x3cb   :  { %v557_v15 = vadd.f32 -1.0, %v626_v14 }
 0x3cd   :  { %v505_v16 = vmul.f32 1.6732632, %v557_v15 }
 0x3cf   :  { %v507_v17 = vsel %vm497_vm7, %v495_v7, %v505_v16 }
 0x3d0   :  { %v509_v18 = vmul.f32 1.050701, %v507_v17 }
 0x3d2   :  { %511 = vst [vmem:[%s823_s11 + $0x8] sm:$0xff] %v509_v18 }

// kernel: model_forward.9
= control target key start
LH: loop header
LB: loop body
LE: loop exit
PB: predicated region body
PF: predicated region fallthrough
CT: control target
= control target key end

     0   :  { %s534_s0 = inlined_call_operand.vmem [shape: f32[128,8], index: 0, kind: input, shape index: {}]   ;;  %s535_s1 = inlined_call_operand.vmem [shape: f32[128,8], index: 1, kind: input, shape index: {}]   ;;  %s536_s2 = inlined_call_operand.vmem [shape: f32[1,8], index: 2, kind: input, shape index: {}]   ;;  %s537_s3 = inlined_call_operand.vmem [shape: f32[8,128], index: 3, kind: input, shape index: {}]   ;;  %s538_s4 = inlined_call_operand.vmem [shape: f32[8,1], index: 4, kind: input, shape index: {}]   ;;  %s539_s5 = inlined_call_operand.vmem [shape: f32[8,8], index: 5, kind: input, shape index: {}]   ;;  %s540_s6 = inlined_call_operand.vmem [shape: f32[8,1], index: 6, kind: input, shape index: {}]   ;;  %s541_s7 = inlined_call_operand.vmem [shape: f32[8,1], index: 7, kind: input, shape index: {}]   ;;  %s542_s8 = inlined_call_operand.<no memory space> [shape: f32[1,1], index: 8, kind: input, shape index: {}]   ;;  %s543_s9 = inlined_call_operand.hbm [shape: f32[1,1], index: 9, kind: output, shape index: {0}]   ;;  %s544_s10 = inlined_call_operand.hbm [shape: f32[1,8], index: 10, kind: output, shape index: {1}]  }
   0x1   :  { %v16_v0 = vstv %s542_s8 }
   0x2   :  { %17 = vst [vmem:[#allocation2] sm:$0x1] %v16_v0 }
   0x3   :  { %18 = vsyncpa [#allocation4], 0  ;;  %v53_v1 = vld [vmem:[%s534_s0 + $0x78] sm:$0xff]  ;;  %v52_v3 = vld [vmem:[%s534_s0 + $0x70] sm:$0xff]  ;;  %v350_v12 = vmov 0  }
   0x4   :  { %v69_v2 = vld [vmem:[%s535_s1 + $0x78] sm:$0xff]  ;;  %v68_v5 = vld [vmem:[%s535_s1 + $0x70] sm:$0xff]  ;;  %v51_v6 = vld [vmem:[%s534_s0 + $0x68] sm:$0xff]  ;;  %282 = vset.pattern.permute.xlu0 %v350_v12  ;;  %283 = vset.pattern.permute.xlu1 %v350_v12 }
   0x5   :  { %v85_v4 = vmul.f32 %v69_v2, %v53_v1  ;;  %v67_v7 = vld [vmem:[%s535_s1 + $0x68] sm:$0xff]  ;;  %v84_v8 = vmul.f32 %v68_v5, %v52_v3  ;;  %v50_v9 = vld [vmem:[%s534_s0 + $0x60] sm:$0xff]  ;;  %v49_v13 = vld [vmem:[%s534_s0 + $0x58] sm:$0xff] }
   0x6   :  { %v66_v10 = vld [vmem:[%s535_s1 + $0x60] sm:$0xff]  ;;  %v83_v11 = vmul.f32 %v67_v7, %v51_v6  ;;  %v65_v14 = vld [vmem:[%s535_s1 + $0x58] sm:$0xff]  ;;  %v48_v16 = vld [vmem:[%s534_s0 + $0x50] sm:$0xff] }
   0x7   :  { %93 = vmatpush.msra.mxu0 %v85_v4  ;;  %v82_v15 = vmul.f32 %v66_v10, %v50_v9  ;;  %v64_v17 = vld [vmem:[%s535_s1 + $0x50] sm:$0xff]  ;;  %v81_v18 = vmul.f32 %v65_v14, %v49_v13  ;;  %v47_v19 = vld [vmem:[%s534_s0 + $0x48] sm:$0xff]  ;;  %v46_v22 = vld [vmem:[%s534_s0 + $0x40] sm:$0xff] }
   0x8   :  { %v63_v20 = vld [vmem:[%s535_s1 + $0x48] sm:$0xff]  ;;  %v80_v21 = vmul.f32 %v64_v17, %v48_v16  ;;  %v62_v23 = vld [vmem:[%s535_s1 + $0x40] sm:$0xff] }
   0x9   :  { %94 = vmatpush.msra.mxu0 %v84_v8  ;;  %v79_v24 = vmul.f32 %v63_v20, %v47_v19  ;;  %v87_v25 = vld [vmem:[%s538_s4] sm:$0xff] }
   0xb   :  { %95 = vmatpush.msra.mxu0 %v83_v11 }
   0xd   :  { %96 = vmatpush.msra.mxu0 %v82_v15 }
   0xf   :  { %97 = vmatpush.msra.mxu0 %v81_v18 }
  0x10   :  { %19 = vsyncpa [#allocation6], 0  ;;  %v45_v26 = vld [vmem:[%s534_s0 + $0x38] sm:$0xff]  ;;  %90 = vperm.xlu0 %282, %v87_v25   ;;  %v78_v28 = vmul.f32 %v62_v23, %v46_v22  ;;  %v44_v29 = vld [vmem:[%s534_s0 + $0x30] sm:$0xff]  ;;  %vm127_vm1 = vcmask 64512   ;;  %vm198_vm5 = vcmask 57344  }
  0x11   :  { %v61_v27 = vld [vmem:[%s535_s1 + $0x38] sm:$0xff]  ;;  %98 = vmatpush.msra.mxu0 %v80_v21  ;;  %v60_v30 = vld [vmem:[%s535_s1 + $0x30] sm:$0xff]  ;;  %v43_v32 = vld [vmem:[%s534_s0 + $0x28] sm:$0xff]  ;;  %s258_s8 = sshll.u32 %s544_s10, 4  ;;  %s353_s10 = smov [#allocation3]   ;;  %vm218_vm10 = vcmask 0   ;;  %s259_s8 = int_to_ptr.hbm [resolvable:$true] %s258_s8 }
  0x12   :  { %v77_v31 = vmul.f32 %v61_v27, %v45_v26  ;;  %v59_v33 = vld [vmem:[%s535_s1 + $0x28] sm:$0xff]  ;;  %v76_v34 = vmul.f32 %v60_v30, %v44_v29  ;;  %v121_v35 = vld [vmem:[%s540_s6] sm:$0xff]  ;;  %v41_v39 = vld [vmem:[%s534_s0 + $0x18] sm:$0xff]  ;;  %s245_s23 = sshll.u32 %s353_s10, 4  ;;  %s247_s26 = sshll.u32 %s543_s9, 4  ;;  %s246_s23 = int_to_ptr.vmem [resolvable:$true] %s245_s23  ;;  %s248_s26 = int_to_ptr.hbm [resolvable:$true] %s247_s26 }
  0x13   :  { %99 = vmatpush.msra.mxu0 %v79_v24  ;;  %v42_v36 = vld [vmem:[%s534_s0 + $0x20] sm:$0xff]  ;;  %v75_v38 = vmul.f32 %v59_v33, %v43_v32  ;;  %v57_v40 = vld [vmem:[%s535_s1 + $0x18] sm:$0xff]  ;;  %v40_v42 = vld [vmem:[%s534_s0 + $0x10] sm:$0xff] }
  0x14   :  { %v58_v37 = vld [vmem:[%s535_s1 + $0x20] sm:$0xff]  ;;  %v56_v43 = vld [vmem:[%s535_s1 + $0x10] sm:$0xff]  ;;  %v73_v44 = vmul.f32 %v57_v40, %v41_v39  ;;  %v39_v45 = vld [vmem:[%s534_s0 + $0x8] sm:$0xff] }
  0x15   :  { %100 = vmatpush.msra.mxu0 %v78_v28  ;;  %v74_v41 = vmul.f32 %v58_v37, %v42_v36  ;;  %v55_v46 = vld [vmem:[%s535_s1 + $0x8] sm:$0xff]  ;;  %v72_v47 = vmul.f32 %v56_v43, %v40_v42  ;;  %v38_v48 = vld [vmem:[%s534_s0] sm:$0xff] }
  0x16   :  { %v54_v49 = vld [vmem:[%s535_s1] sm:$0xff]  ;;  %v71_v50 = vmul.f32 %v55_v46, %v39_v45 }
  0x17   :  { %101 = vmatpush.msra.mxu0 %v77_v31  ;;  %v70_v51 = vmul.f32 %v54_v49, %v38_v48  ;;  %v86_v52 = vld [vmem:[%s537_s3] sm:$0xff] }
  0x18   :  { %124 = vperm.xlu0 %282, %v121_v35   ;;  %v158_v53 = vld [vmem:[%s541_s7] sm:$0xff] }
  0x19   :  { %102 = vmatpush.msra.mxu0 %v76_v34  ;;  %161 = vperm.xlu1 %283, %v158_v53   ;;  %v172_v54 = vld [vmem:[#allocation2] sm:$0x1] }
  0x1a   :  { %v120_v0 = vld [vmem:[%s539_s5] sm:$0xff] }
  0x1b   :  { %103 = vmatpush.msra.mxu0 %v75_v38  ;;  %v180_v31 = vld [vmem:[%s536_s2] sm:$0x1]  ;;  %s351_s2 = smov [#allocation5]  }
  0x1c   :  { %s256_s7 = sshll.u32 %s351_s2, 4  ;;  %s257_s7 = int_to_ptr.vmem [resolvable:$true] %s256_s7 }
  0x1d   :  { %104 = vmatpush.msra.mxu0 %v74_v41 }
  0x1f   :  { %105 = vmatpush.msra.mxu0 %v73_v44 }
  0x21   :  { %106 = vmatpush.msra.mxu0 %v72_v47  ;;  %175 = vperm.xlu1 %283, %v172_v54  }
  0x23   :  { %107 = vmatpush.msra.mxu0 %v71_v50 }
  0x25   :  { %108 = vmatpush.msra.mxu0 %v70_v51 }
  0x26   :  { %109 = vmatmul.f32.vlgmr.msra.gmra.mxu0 %v86_v52 }
  0x82   :  { %v91_v55 = vpop.permute.xlu0 %90 }
  0x8a   :  { %v125_v1 = vpop.permute.xlu0 %124 }
  0x8b   :  { %v162_v10 = vpop.permute.xlu1 %161 }
  0x93   :  { %v176_v17 = vpop.permute.xlu1 %175 }
  0x94   :  { %v178_v20 = vperm.slane %v176_v17, 0 }
  0xa3   :  { %v110_v56 = vpop.f32.mrf.mxu0 }
  0xa4   :  { %v111_v57 = vadd.f32 %v110_v56, %v91_v55 }
  0xa6   :  { %v114_v58 = vmul.f32 1.442695, %v111_v57  ;;  %vm113_vm0 = vcmp.gt.f32.partialorder %v111_v57, 0.0 }
  0xa8   :  { %284 = vpow2.f32 %v114_v58 }
  0xae   :  { %v285_v59 = vpop.eup %284 }
  0xaf   :  { %v272_v60 = vadd.f32 -1.0, %v285_v59 }
  0xb1   :  { %v117_v61 = vmul.f32 1.6732632, %v272_v60  ;;  %v352_v60 = vmov 8.0  }
  0xb3   :  { %v118_v62 = vsel %vm113_vm0, %v111_v57, %v117_v61 }
  0xb4   :  { %v119_v63 = vmul.f32 1.050701, %v118_v62 }
  0xb6   :  { %146 = vmatpush.msra.mxu1 %v119_v63 }
  0xb7   :  { %273 = vmatmul.msk.f32.vlgmr.msra.gmra.mxu1 %vm127_vm1, %v120_v0 }
 0x134   :  { %v148_v2 = vpop.f32.mrf.mxu1 }
 0x135   :  { %v149_v3 = vadd.f32 %v148_v2, %v125_v1 }
 0x137   :  { %v152_v4 = vmul.f32 1.442695, %v149_v3  ;;  %vm151_vm2 = vcmp.gt.f32.partialorder %v149_v3, 0.0 }
 0x139   :  { %286 = vpow2.f32 %v152_v4 }
 0x13f   :  { %v287_v5 = vpop.eup %286 }
 0x140   :  { %v274_v6 = vadd.f32 -1.0, %v287_v5 }
 0x142   :  { %v155_v7 = vmul.f32 1.6732632, %v274_v6 }
 0x144   :  { %v156_v8 = vsel %vm151_vm2, %v149_v3, %v155_v7 }
 0x145   :  { %v157_v9 = vmul.f32 1.050701, %v156_v8 }
 0x147   :  { %v164_v11 = vmul.f32 %v162_v10, %v157_v9 }
 0x149   :  { %v165_v12 = vsel %vm127_vm1, %v164_v11, 0.0 }
 0x14a   :  { %v166_v13 = vrot.slane %v165_v12, 4 }
 0x14c   :  { %v167_v14 = vadd.f32 %v166_v13, %v165_v12 }
 0x14e   :  { %v168_v15 = vrot.slane %v167_v14, 2 }
 0x150   :  { %v169_v16 = vadd.f32 %v168_v15, %v167_v14 }
 0x152   :  { %v170_v18 = vrot.slane %v169_v16, 1 }
 0x154   :  { %v171_v19 = vadd.f32 %v170_v18, %v169_v16 }
 0x156   :  { %v179_v21 = vadd.f32 %v178_v20, %v171_v19 }
 0x158   :  { %v184_v22 = vand.u32 2147483647, %v179_v21  ;;  %v275_v23 = vmul.f32 -1.442695, %v179_v21  ;;  %v181_v35 = vmax.f32 %v179_v21, 0.0  ;;  %v182_v36 = vmul.f32 %v180_v31, %v179_v21 }
 0x15a   :  { %v185_v24 = vsub.f32 0.0, %v184_v22  ;;  %288 = vpow2.f32 %v275_v23  ;;  %v183_v45 = vsub.f32 %v181_v35, %v182_v36 }
 0x15c   :  { %v186_v25 = vmul.f32 1.442695, %v185_v24 }
 0x15e   :  { %290 = vpow2.f32 %v186_v25 }
 0x160   :  { %v289_v26 = vpop.eup %288 }
 0x161   :  { %v223_v27 = vadd.f32 1.0, %v289_v26 }
 0x163   :  { %292 = vrcp.f32 %v223_v27  ;;  %v233_v40 = vand.u32 2147483647, %v223_v27  ;;  %v235_v41 = vand.u32 2147483648, %v223_v27  ;;  %vm229_vm6 = vweird.f32 %v223_v27 }
 0x164   :  { %v291_v28 = vpop.eup %290 }
 0x165   :  { %v188_v29 = vadd.f32 1.0, %v291_v28  ;;  %v191_v30 = vmul.f32 -0.5, %v291_v28  ;;  %v194_v37 = vand.u32 2147483647, %v291_v28  ;;  %v236_v49 = vor.u32 1.1754944e-38, %v235_v41 }
 0x166   :  { %vm234_vm8 = vcmp.eq.f32.partialorder %v233_v40, 8.507059e+37 }
 0x167   :  { %294 = vlog2.f32 %v188_v29  ;;  %v192_v33 = vadd.f32 1.0, %v191_v30  ;;  %vm195_vm4 = vcmp.lt.f32.partialorder %v194_v37, 0.0004427343 }
 0x168   :  { %296 = vrcp.f32 %v352_v60 }
 0x169   :  { %v293_v32 = vpop.eup %292  ;;  %v193_v43 = vmul.f32 %v291_v28, %v192_v33 }
 0x16a   :  { %v225_v34 = vmul.f32 %v293_v32, %v223_v27  ;;  %vm230_vm3 = vweird.f32 %v293_v32 }
 0x16b   :  { %vm231_vm7 = vmor %vm229_vm6, %vm230_vm3 }
 0x16c   :  { %v226_v38 = vsub.f32 1.0, %v225_v34 }
 0x16d   :  { %v295_v39 = vpop.eup %294 }
 0x16e   :  { %v190_v42 = vmul.f32 0.6931472, %v295_v39  ;;  %v227_v44 = vmul.f32 %v293_v32, %v226_v38  ;;  %v297_v61 = vpop.eup %296 }
 0x16f   :  { %v211_v62 = vmul.f32 8.0, %v297_v61  ;;  %vm215_vm9 = vweird.f32 %v297_v61 }
 0x170   :  { %v196_v46 = vsel %vm195_vm4, %v193_v43, %v190_v42  ;;  %v228_v47 = vadd.f32 %v293_v32, %v227_v44 }
 0x171   :  { %v197_v48 = vadd.f32 %v196_v46, %v183_v45  ;;  %v212_v63 = vsub.f32 1.0, %v211_v62 }
 0x172   :  { %v232_v50 = vsel %vm231_vm7, %v293_v32, %v228_v47 }
 0x173   :  { %v199_v51 = vsel %vm198_vm5, %v197_v48, 0.0  ;;  %v237_v52 = vsel %vm234_vm8, %v236_v49, %v232_v50  ;;  %v213_v0 = vmul.f32 %v297_v61, %v212_v63 }
 0x174   :  { %239 = vst.msk [vmem:[#allocation5] sm:$0x1] %vm198_vm5, %v237_v52  ;;  %200 = vadd.xlane.f32.xlu2 %v199_v51 }
 0x175   :  { %261 = dma.vmem_to_hbm [thread:$0]  %s257_s7, 16, %s259_s8, [#allocation6]   ;;  %v214_v1 = vadd.f32 %v297_v61, %v213_v0 }
 0x177   :  { %v216_v2 = vsel %vm215_vm9, %v297_v61, %v214_v1 }
 0x1e7   :  { %v201_v53 = vpop.xlane.xlu2 %200 }
 0x1e8   :  { %v202_v54 = vrot.slane %v201_v53, 4 }
 0x1ea   :  { %v203_v55 = vadd.f32 %v202_v54, %v201_v53 }
 0x1ec   :  { %v204_v56 = vrot.slane %v203_v55, 2 }
 0x1ee   :  { %v205_v57 = vadd.f32 %v204_v56, %v203_v55 }
 0x1f0   :  { %v206_v58 = vrot.slane %v205_v57, 1 }
 0x1f2   :  { %v207_v59 = vadd.f32 %v206_v58, %v205_v57 }
 0x1f4   :  { %276 = vpush %v207_v59 }
 0x225   :  { %s277_s6 = spop %276 }
 0x226   :  { %v209_v3 = vstv %s277_s6 }
 0x227   :  { %v217_v4 = vmul.f32 %v216_v2, %v209_v3 }
 0x229   :  { %219 = vst.msk [vmem:[#allocation3] sm:$0x1] %vm218_vm10, %v217_v4 }
 0x22a   :  { %250 = dma.vmem_to_hbm [thread:$0]  %s246_s23, 16, %s248_s26, [#allocation4]  }
 0x22b   :  { %346 = dma.done.wait [#allocation4], 16  }
 0x22c   :  { %347 = vsyncadd [#allocation4], 4294967280 }
 0x22d   :  { %348 = dma.done.wait [#allocation6], 16  }
 0x22e   :  { %349 = vsyncadd [#allocation6], 4294967280 }
 0x22f   :  { %270 = vsyncpa [#allocation4], 1 }
 0x230   :  { %271 = vsyncpa [#allocation6], 1 }

// kernel: model_forward.8
= control target key start
LH: loop header
LB: loop body
LE: loop exit
PB: predicated region body
PF: predicated region fallthrough
CT: control target
= control target key end

     0   :  { %vm61_vm0 = vcmask 1042432   ;;  %v622_v2 = vmov 1   ;;  %v623_v5 = vmov 3   ;;  %vm57_vm1 = vcmask 48128   ;;  %s806_s5 = inlined_call_operand.vmem [shape: bf16[6,8], index: 5, kind: input, shape index: {}]   ;;  %s807_s0 = inlined_call_operand.vmem [shape: bf16[16,6], index: 0, kind: input, shape index: {}]   ;;  %s808_s7 = inlined_call_operand.vmem [shape: f32[1,8], index: 7, kind: input, shape index: {}]   ;;  %s809_s6 = inlined_call_operand.vmem [shape: f32[1,8], index: 6, kind: input, shape index: {}]   ;;  %s810_s8 = inlined_call_operand.<no memory space> [shape: f32[1,1], index: 8, kind: input, shape index: {}]   ;;  %s811_s1 = inlined_call_operand.vmem [shape: f32[8,128], index: 1, kind: input, shape index: {}]   ;;  %s812_s3 = inlined_call_operand.vmem [shape: bf16[16,128], index: 3, kind: input, shape index: {}]   ;;  %s813_s2 = inlined_call_operand.vmem [shape: bf16[128,8], index: 2, kind: input, shape index: {}]   ;;  %s814_s10 = inlined_call_operand.vmem [shape: f32[1,128], index: 10, kind: input, shape index: {}]   ;;  %s815_s9 = inlined_call_operand.vmem [shape: f32[8,128], index: 9, kind: input, shape index: {}]   ;;  %s816_s4 = inlined_call_operand.vmem [shape: f32[16,128], index: 4, kind: input, shape index: {}]   ;;  %s817_s11 = inlined_call_operand.vmem [shape: f32[16,128], index: 11, kind: output, shape index: {}]  }
   0x1   :  { %v47_v0 = vld [vmem:[%s806_s5] sm:$0x7]  ;;  %576 = vset.pattern.permute.xlu1 %v622_v2  ;;  %578 = vset.pattern.permute.xlu2 %v623_v5  ;;  %v624_v6 = vmov 5   ;;  %v625_v7 = vmov 2   ;;  %v626_v8 = vmov 4   ;;  %v627_v9 = vmov 0  }
   0x2   :  { %v553_v1 = vld [vmem:[%s807_s0] sm:$0xff]  ;;  %v63_v3 = vsel %vm61_vm0, %v47_v0, 0  ;;  %580 = vset.pattern.permute.xlu0 %v624_v6  ;;  %vm79_vm2 = vcmask 64512   ;;  %v628_v16 = vmov 6   ;;  %v629_v17 = vmov 7  }
   0x3   :  { %v701_v4 = vld [vmem:[%s808_s7] ss:$0 sm:$0xff]  ;;  %72 = vmatpush.bf16.msra.mxu0 %v63_v3  ;;  %v16_v19 = vstv %s810_s8  ;;  %vm82_vm3 = vcmask 7168   ;;  %v630_v59 = vmov -1e+30  }
   0x4   :  { %132 = vperm.xlu1 %576, %v701_v4   ;;  %174 = vperm.xlu2 %578, %v701_v4   ;;  %v603_v10 = vld [vmem:[%s809_s6] ss:$0 sm:$0xff]  ;;  %17 = vst [vmem:[#allocation6] sm:$0x1] %v16_v19 }
   0x5   :  { %216 = vperm.xlu0 %580, %v701_v4   ;;  %v730_v35 = vld [vmem:[%s811_s1] sm:$0xff]  ;;  %84 = vst.msk [vmem:[#allocation3 + $0x8] sm:$0xff] %vm82_vm3, %v630_v59 }
   0x6   :  { %516 = vmatmul.msk.bf16.vlgmr.msra.gmra.mxu0 %vm57_vm1, %v553_v1  ;;  %v126_v36 = vperm.slane %v730_v35, 1  ;;  %v102_v37 = vperm.slane %v730_v35, 0  ;;  %v147_v42 = vperm.slane %v730_v35, 2  ;;  %v168_v49 = vperm.slane %v730_v35, 3  ;;  %83 = vst.msk [vmem:[#allocation3] sm:$0xff] %vm82_vm3, %v630_v59 }
   0x7   :  { %v189_v57 = vperm.slane %v730_v35, 4  ;;  %v210_v0 = vperm.slane %v730_v35, 5 }
   0xb   :  { %v604_v20 = vld [vmem:[#allocation6] ss:$0 sm:$0xff] }
   0xc   :  { %577 = vset.pattern.permute.xlu1 %v625_v7  ;;  %579 = vset.pattern.permute.xlu2 %v626_v8 }
   0xd   :  { %153 = vperm.xlu1 %577, %v701_v4   ;;  %581 = vset.pattern.permute.xlu0 %v627_v9 }
   0xe   :  { %195 = vperm.xlu2 %579, %v701_v4   ;;  %111 = vperm.xlu0 %581, %v701_v4  }
  0x15   :  { %582 = vset.pattern.permute.xlu1 %v622_v2 }
  0x16   :  { %583 = vset.pattern.permute.xlu2 %v625_v7 }
  0x5e   :  { %v719_v21 = vpop.permute.xlu2 %174 }
  0x68   :  { %v723_v24 = vpop.permute.xlu2 %195 }
  0x76   :  { %v133_v22 = vpop.permute.xlu1 %132 }
  0x77   :  { %v721_v23 = vpop.permute.xlu0 %216 }
  0x7f   :  { %v154_v25 = vpop.permute.xlu1 %153 }
  0x80   :  { %v112_v26 = vpop.permute.xlu0 %111 }
  0x83   :  { %v74_v11 = vpop.f32.mrf.mxu0 }
  0x84   :  { %v75_v12 = vadd.f32 %v603_v10, %v74_v11 }
  0x86   :  { %80 = vst.msk [vmem:[#allocation2] sm:$0xff] %vm79_vm2, %v75_v12 }
  0x8b   :  { %v76_v13 = vpop.f32.mrf.mxu0 }
  0x8c   :  { %v77_v14 = vadd.f32 %v603_v10, %v76_v13 }
  0x8d   :  { %v89_v15 = vld [vmem:[#allocation2] sm:$0xff] }
  0x8e   :  { %81 = vst.msk [vmem:[#allocation2 + $0x8] sm:$0xff] %vm79_vm2, %v77_v14  ;;  %140 = vperm.xlu2 %583, %v89_v15   ;;  %119 = vperm.xlu1 %582, %v89_v15  }
  0x8f   :  { %94 = vperm.xlu0 %581, %v89_v15  }
  0x95   :  { %v90_v18 = vld [vmem:[#allocation2 + $0x8] sm:$0xff] }
  0x96   :  { %584 = vset.pattern.permute.xlu2 %v623_v5  ;;  %587 = vset.pattern.permute.xlu1 %v628_v16 }
  0x97   :  { %586 = vset.pattern.permute.xlu0 %v624_v6  ;;  %161 = vperm.xlu2 %584, %v89_v15  }
  0x98   :  { %224 = vperm.xlu1 %587, %v89_v15   ;;  %203 = vperm.xlu0 %586, %v89_v15  }
  0x9f   :  { %585 = vset.pattern.permute.xlu2 %v626_v8 }
  0xa0   :  { %588 = vset.pattern.permute.xlu1 %v629_v17  ;;  %589 = vset.pattern.permute.xlu0 %v627_v9 }
  0xa1   :  { %182 = vperm.xlu2 %585, %v89_v15   ;;  %245 = vperm.xlu1 %588, %v89_v15  }
  0xa2   :  { %99 = vperm.xlu0 %589, %v90_v18  }
  0xa9   :  { %591 = vset.pattern.permute.xlu2 %v625_v7  ;;  %590 = vset.pattern.permute.xlu1 %v622_v2 }
  0xaa   :  { %592 = vset.pattern.permute.xlu0 %v623_v5  ;;  %144 = vperm.xlu2 %591, %v90_v18  }
  0xab   :  { %123 = vperm.xlu1 %590, %v90_v18   ;;  %165 = vperm.xlu0 %592, %v90_v18  }
  0xb2   :  { %597 = vset.pattern.permute.xlu2 %v628_v16 }
  0xb3   :  { %594 = vset.pattern.permute.xlu1 %v626_v8  ;;  %593 = vset.pattern.permute.xlu0 %v628_v16  ;;  %v231_v8 = vperm.slane %v730_v35, 6 }
  0xb4   :  { %228 = vperm.xlu2 %597, %v90_v18   ;;  %186 = vperm.xlu1 %594, %v90_v18  }
  0xb5   :  { %237 = vperm.xlu0 %593, %v701_v4  }
  0xbc   :  { %598 = vset.pattern.permute.xlu2 %v629_v17  ;;  %595 = vset.pattern.permute.xlu1 %v624_v6 }
  0xbd   :  { %249 = vperm.xlu2 %598, %v90_v18   ;;  %207 = vperm.xlu1 %595, %v90_v18  }
  0xbe   :  { %600 = vset.pattern.permute.xlu0 %v627_v9 }
  0xc5   :  { %596 = vset.pattern.permute.xlu1 %v629_v17  ;;  %599 = vset.pattern.permute.xlu2 %v627_v9 }
  0xc6   :  { %258 = vperm.xlu1 %596, %v701_v4   ;;  %269 = vperm.xlu2 %599, %v604_v20  }
  0xce   :  { %601 = vset.pattern.permute.xlu1 %v627_v9 }
  0xe8   :  { %v141_v27 = vpop.permute.xlu2 %140 }
  0xe9   :  { %v148_v48 = vadd.f32 %v147_v42, %v141_v27 }
  0xeb   :  { %v150_v55 = vmax.f32 %v148_v48, 0.0 }
  0xed   :  { %v156_v5 = vmul.f32 %v154_v25, %v150_v55 }
  0xf1   :  { %v162_v30 = vpop.permute.xlu2 %161 }
  0xf2   :  { %v169_v56 = vadd.f32 %v168_v49, %v162_v30 }
  0xf4   :  { %v171_v6 = vmax.f32 %v169_v56, 0.0 }
  0xf6   :  { %v177_v15 = vmul.f32 %v719_v21, %v171_v6  ;;  %v559_v6 = vld [vmem:[%s813_s2 + $0x28] sm:$0xff] }
  0xfb   :  { %v183_v33 = vpop.permute.xlu2 %182 }
  0xfc   :  { %v190_v7 = vadd.f32 %v189_v57, %v183_v33 }
  0xfe   :  { %v192_v16 = vmax.f32 %v190_v7, 0.0  ;;  %v295_v7 = vld [vmem:[#allocation3 + $0x8] sm:$0xff] }
 0x100   :  { %v120_v28 = vpop.permute.xlu1 %119 }
 0x101   :  { %v95_v29 = vpop.permute.xlu0 %94  ;;  %v127_v38 = vadd.f32 %v126_v36, %v120_v28 }
 0x102   :  { %v103_v39 = vadd.f32 %v102_v37, %v95_v29 }
 0x103   :  { %v129_v45 = vmax.f32 %v127_v38, 0.0 }
 0x104   :  { %v145_v41 = vpop.permute.xlu2 %144  ;;  %v105_v46 = vmax.f32 %v103_v39, 0.0 }
 0x105   :  { %v135_v51 = vmul.f32 %v133_v22, %v129_v45  ;;  %v149_v53 = vadd.f32 %v147_v42, %v145_v41 }
 0x106   :  { %v114_v52 = vmul.f32 %v112_v26, %v105_v46 }
 0x107   :  { %v151_v1 = vmax.f32 %v149_v53, 0.0 }
 0x108   :  { %v137_v63 = vadd.f32 %v135_v51, %v114_v52 }
 0x109   :  { %v157_v12 = vmul.f32 %v154_v25, %v151_v1  ;;  %v198_v25 = vmul.f32 %v723_v24, %v192_v16 }
 0x10a   :  { %v225_v31 = vpop.permute.xlu1 %224  ;;  %v204_v32 = vpop.permute.xlu0 %203  ;;  %v158_v10 = vadd.f32 %v156_v5, %v137_v63  ;;  %v560_v5 = vld [vmem:[%s813_s2 + $0x30] sm:$0xff] }
 0x10b   :  { %v211_v11 = vadd.f32 %v210_v0, %v204_v32  ;;  %v232_v17 = vadd.f32 %v231_v8, %v225_v31 }
 0x10c   :  { %v179_v19 = vadd.f32 %v177_v15, %v158_v10 }
 0x10d   :  { %v213_v20 = vmax.f32 %v211_v11, 0.0  ;;  %v234_v33 = vmax.f32 %v232_v17, 0.0  ;;  %v558_v17 = vld [vmem:[%s813_s2 + $0x20] sm:$0xff] }
 0x10e   :  { %v229_v60 = vpop.permute.xlu2 %228  ;;  %v200_v31 = vadd.f32 %v198_v25, %v179_v19  ;;  %v556_v19 = vld [vmem:[%s813_s2 + $0x10] sm:$0xff] }
 0x10f   :  { %v233_v27 = vadd.f32 %v231_v8, %v229_v60  ;;  %v219_v39 = vmul.f32 %v721_v23, %v213_v20  ;;  %v294_v8 = vld [vmem:[#allocation3] sm:$0xff]  ;;  %v555_v20 = vld [vmem:[%s813_s2 + $0x8] sm:$0xff] }
 0x111   :  { %v235_v41 = vmax.f32 %v233_v27, 0.0  ;;  %v221_v46 = vadd.f32 %v219_v39, %v200_v31 }
 0x113   :  { %v725_v34 = vpop.permute.xlu1 %245 }
 0x114   :  { %v100_v40 = vpop.permute.xlu0 %99 }
 0x115   :  { %v104_v47 = vadd.f32 %v102_v37, %v100_v40 }
 0x117   :  { %v106_v54 = vmax.f32 %v104_v47, 0.0  ;;  %v250_v28 = vpop.permute.xlu2 %249 }
 0x119   :  { %v115_v2 = vmul.f32 %v112_v26, %v106_v54 }
 0x11d   :  { %v124_v43 = vpop.permute.xlu1 %123  ;;  %v166_v58 = vpop.permute.xlu0 %165 }
 0x11e   :  { %v128_v44 = vadd.f32 %v126_v36, %v124_v43  ;;  %v170_v3 = vadd.f32 %v168_v49, %v166_v58 }
 0x120   :  { %v130_v50 = vmax.f32 %v128_v44, 0.0  ;;  %v172_v13 = vmax.f32 %v170_v3, 0.0  ;;  %v270_v54 = vpop.permute.xlu2 %269  ;;  %v631_v3 = vmov 0.0  }
 0x121   :  { %87 = vst.msk [vmem:[#allocation5] sm:$0xff] %vm79_vm2, %v631_v3 }
 0x122   :  { %v136_v61 = vmul.f32 %v133_v22, %v130_v50  ;;  %v252_v22 = vperm.slane %v730_v35, 7  ;;  %v178_v29 = vmul.f32 %v719_v21, %v172_v13  ;;  %v283_v50 = vlaneseq  ;;  %85 = vst.msk [vmem:[#allocation4] sm:$0xff] %vm82_vm3, %v631_v3 }
 0x123   :  { %86 = vst.msk [vmem:[#allocation4 + $0x8] sm:$0xff] %vm82_vm3, %v631_v3 }
 0x124   :  { %v138_v9 = vadd.f32 %v136_v61, %v115_v2  ;;  %v253_v40 = vadd.f32 %v252_v22, %v725_v34  ;;  %v254_v35 = vadd.f32 %v252_v22, %v250_v28  ;;  %v563_v34 = vld [vmem:[%s812_s3] sm:$0xff]   ;;  %88 = vst.msk [vmem:[#allocation5 + $0x8] sm:$0xff] %vm79_vm2, %v631_v3 }
 0x125   :  { %v565_v59 = vunpack.c.h.bf16 %v563_v34  ;;  %v564_v60 = vunpack.c.l.bf16 %v563_v34  ;;  %v554_v22 = vld [vmem:[%s813_s2] sm:$0xff] }
 0x126   :  { %v187_v62 = vpop.permute.xlu1 %186  ;;  %v159_v18 = vadd.f32 %v157_v12, %v138_v9  ;;  %v255_v47 = vmax.f32 %v253_v40, 0.0 }
 0x127   :  { %v191_v4 = vadd.f32 %v189_v57, %v187_v62  ;;  %v238_v37 = vpop.permute.xlu0 %237 }
 0x128   :  { %v180_v36 = vadd.f32 %v178_v29, %v159_v18  ;;  %v240_v21 = vmul.f32 %v238_v37, %v234_v33  ;;  %v241_v44 = vmul.f32 %v238_v37, %v235_v41  ;;  %v557_v18 = vld [vmem:[%s813_s2 + $0x18] sm:$0xff] }
 0x129   :  { %v193_v14 = vmax.f32 %v191_v4, 0.0  ;;  %v561_v4 = vld [vmem:[%s813_s2 + $0x38] sm:$0xff]  ;;  %v320_v31 = vld [vmem:[#allocation4] sm:$0xff] }
 0x12a   :  { %v242_v51 = vadd.f32 %v240_v21, %v221_v46  ;;  %412 = vmatpush.bf16.msra.mxu1 %v561_v4  ;;  %v321_v41 = vld [vmem:[#allocation4 + $0x8] sm:$0xff] }
 0x12b   :  { %v199_v30 = vmul.f32 %v723_v24, %v193_v14  ;;  %v256_v24 = vmax.f32 %v254_v35, 0.0 }
 0x12d   :  { %v201_v42 = vadd.f32 %v199_v30, %v180_v36 }
 0x12e   :  { %413 = vmatpush.bf16.msra.mxu1 %v560_v5  ;;  %v489_v5 = vld [vmem:[%s816_s4 + $0x8] sm:$0xff] }
 0x12f   :  { %v208_v26 = vpop.permute.xlu1 %207 }
 0x130   :  { %v212_v32 = vadd.f32 %v210_v0, %v208_v26 }
 0x132   :  { %v214_v38 = vmax.f32 %v212_v32, 0.0  ;;  %414 = vmatpush.bf16.msra.mxu1 %v559_v6 }
 0x134   :  { %v220_v43 = vmul.f32 %v721_v23, %v214_v38  ;;  %v284_v23 = vand.u32 127, %v283_v50 }
 0x136   :  { %v222_v45 = vadd.f32 %v220_v43, %v201_v42  ;;  %vm287_vm4 = vcmp.lt.s32.totalorder %v284_v23, 16  ;;  %415 = vmatpush.bf16.msra.mxu1 %v558_v17 }
 0x138   :  { %v259_v48 = vpop.permute.xlu1 %258  ;;  %v243_v49 = vadd.f32 %v241_v44, %v222_v45  ;;  %v333_v45 = vld [vmem:[#allocation5] sm:$0xff] }
 0x139   :  { %v261_v52 = vmul.f32 %v259_v48, %v255_v47  ;;  %v262_v53 = vmul.f32 %v259_v48, %v256_v24 }
 0x13a   :  { %416 = vmatpush.bf16.msra.mxu1 %v557_v18 }
 0x13b   :  { %v263_v55 = vadd.f32 %v261_v52, %v242_v51  ;;  %v264_v56 = vadd.f32 %v262_v53, %v243_v49  ;;  %v334_v51 = vld [vmem:[#allocation5 + $0x8] sm:$0xff] }
 0x13d   :  { %v272_v57 = vadd.f32 %v270_v54, %v263_v55  ;;  %v273_v58 = vadd.f32 %v270_v54, %v264_v56  ;;  %v454_v56 = vld [vmem:[%s815_s9] sm:$0xff] }
 0x13e   :  { %417 = vmatpush.bf16.msra.mxu1 %v556_v19  ;;  %480 = vmatpush.msra.mxu2 %v454_v56 }
 0x13f   :  { %v274_v61 = vmax.f32 %v272_v57, 0.0  ;;  %v275_v62 = vmax.f32 %v273_v58, 0.0 }
 0x141   :  { %v281_v63 = vmul.f32 %v565_v59, %v275_v62  ;;  %v280_v0 = vmul.f32 %v564_v60, %v274_v61  ;;  %v605_v62 = vld [vmem:[%s814_s10] ss:$0 sm:$0xff] }
 0x142   :  { %418 = vmatpush.bf16.msra.mxu1 %v555_v20 }
 0x143   :  { %v289_v1 = vsel %vm287_vm4, %v281_v63, -1e+30  ;;  %v288_v2 = vsel %vm287_vm4, %v280_v0, -1e+30  ;;  %v488_v0 = vld [vmem:[%s816_s4] sm:$0xff] }
 0x144   :  { %292 = vmax.xlane.f32.xlu2 %v289_v1  ;;  %290 = vmax.xlane.f32.xlu1 %v288_v2 }
 0x146   :  { %419 = vmatpush.bf16.msra.mxu1 %v554_v22 }
 0x1b7   :  { %v293_v9 = vpop.xlane.xlu2 %292  ;;  %v291_v10 = vpop.xlane.xlu1 %290 }
 0x1b8   :  { %v297_v11 = vmax.f32 %v295_v7, %v293_v9  ;;  %v296_v12 = vmax.f32 %v294_v8, %v291_v10 }
 0x1ba   :  { %v299_v13 = vsub.f32 %v295_v7, %v297_v11  ;;  %432 = vst.msk [vmem:[#allocation3 + $0x8] sm:$0xff] %vm82_vm3, %v297_v11  ;;  %v298_v14 = vsub.f32 %v294_v8, %v296_v12  ;;  %306 = vperm.xlu0 %600, %v296_v12  }
 0x1bb   :  { %431 = vst.msk [vmem:[#allocation3] sm:$0xff] %vm82_vm3, %v296_v12 }
 0x1bc   :  { %v300_v15 = vmul.f32 1.442695, %v298_v14  ;;  %v302_v37 = vmul.f32 1.442695, %v299_v13 }
 0x1be   :  { %606 = vpow2.f32 %v300_v15 }
 0x1c2   :  { %311 = vperm.xlu0 %600, %v297_v11  }
 0x1c4   :  { %v607_v16 = vpop.eup %606 }
 0x1c5   :  { %337 = vperm.xlu1 %601, %v607_v16   ;;  %v322_v39 = vmul.f32 %v607_v16, %v320_v31 }
 0x22c   :  { %v307_v26 = vpop.permute.xlu0 %306 }
 0x22d   :  { %v314_v27 = vsub.f32 %v288_v2, %v307_v26 }
 0x22f   :  { %v316_v28 = vmul.f32 1.442695, %v314_v27 }
 0x231   :  { %608 = vpow2.f32 %v316_v28 }
 0x234   :  { %v312_v29 = vpop.permute.xlu0 %311 }
 0x235   :  { %v315_v30 = vsub.f32 %v289_v1, %v312_v29 }
 0x237   :  { %v609_v32 = vpop.eup %608  ;;  %v318_v25 = vmul.f32 1.442695, %v315_v30  ;;  %v338_v46 = vpop.permute.xlu1 %337 }
 0x238   :  { %324 = vadd.xlane.f32.xlu0 %v609_v32  ;;  %v345_v48 = vmul.f32 %v338_v46, %v333_v45 }
 0x239   :  { %610 = vpow2.f32 %v318_v25 }
 0x23a   :  { %612 = vpow2.f32 %v302_v37 }
 0x23f   :  { %v611_v33 = vpop.eup %610 }
 0x240   :  { %326 = vadd.xlane.f32.xlu2 %v611_v33  ;;  %v347_v36 = vpack.c.bf16 %v611_v33, %v609_v32  ;;  %v613_v38 = vpop.eup %612 }
 0x241   :  { %v323_v42 = vmul.f32 %v613_v38, %v321_v41 }
 0x242   :  { %420 = vmatmul.bf16.vlgmr.msra.gmra.mxu1 %v347_v36 }
 0x258   :  { %342 = vperm.xlu2 %599, %v613_v38  }
 0x2ab   :  { %v325_v40 = vpop.xlane.xlu0 %324 }
 0x2ac   :  { %v328_v35 = vadd.f32 %v325_v40, %v322_v39 }
 0x2ae   :  { %331 = vst.msk [vmem:[#allocation4] sm:$0xff] %vm82_vm3, %v328_v35 }
 0x2b3   :  { %v327_v43 = vpop.xlane.xlu2 %326 }
 0x2b4   :  { %v329_v21 = vadd.f32 %v327_v43, %v323_v42 }
 0x2b5   :  { %v438_v44 = vld [vmem:[#allocation4] sm:$0xff] }
 0x2b6   :  { %332 = vst.msk [vmem:[#allocation4 + $0x8] sm:$0xff] %vm82_vm3, %v329_v21  ;;  %614 = vrcp.f32 %v438_v44 }
 0x2bb   :  { %v343_v52 = vpop.permute.xlu2 %342 }
 0x2bc   :  { %v615_v47 = vpop.eup %614  ;;  %v346_v54 = vmul.f32 %v343_v52, %v334_v51 }
 0x2bd   :  { %444 = vperm.xlu1 %601, %v615_v47   ;;  %v439_v24 = vld [vmem:[#allocation4 + $0x8] sm:$0xff] }
 0x2be   :  { %616 = vrcp.f32 %v439_v24 }
 0x2bf   :  { %v421_v49 = vpop.f32.mrf.mxu1 }
 0x2c0   :  { %v426_v50 = vadd.f32 %v421_v49, %v345_v48 }
 0x2c2   :  { %429 = vst.msk [vmem:[#allocation5] sm:$0xff] %vm79_vm2, %v426_v50 }
 0x2c4   :  { %v617_v53 = vpop.eup %616 }
 0x2c5   :  { %449 = vperm.xlu2 %599, %v617_v53  }
 0x2c7   :  { %v423_v34 = vpop.f32.mrf.mxu1 }
 0x2c8   :  { %v427_v55 = vadd.f32 %v423_v34, %v346_v54 }
 0x2c9   :  { %v436_v23 = vld [vmem:[#allocation5] sm:$0xff] }
 0x2ca   :  { %430 = vst.msk [vmem:[#allocation5 + $0x8] sm:$0xff] %vm79_vm2, %v427_v55 }
 0x2d1   :  { %v437_v60 = vld [vmem:[#allocation5 + $0x8] sm:$0xff] }
 0x31f   :  { %v450_v59 = vpop.permute.xlu2 %449 }
 0x320   :  { %v453_v61 = vmul.f32 %v450_v59, %v437_v60 }
 0x32f   :  { %v445_v57 = vpop.permute.xlu1 %444 }
 0x330   :  { %v452_v58 = vmul.f32 %v445_v57, %v436_v23 }
 0x332   :  { %549 = vmatmul.msk.f32.vlgmr.msra.gmra.mxu2 %vm79_vm2, %v452_v58 }
 0x33a   :  { %550 = vmatmul.msk.f32.gmra.mxu2 %vm79_vm2, %v453_v61 }
 0x3b5   :  { %v482_v63 = vpop.f32.mrf.mxu2 }
 0x3b6   :  { %v483_v1 = vadd.f32 %v605_v62, %v482_v63 }
 0x3b8   :  { %v490_v2 = vadd.f32 %v488_v0, %v483_v1 }
 0x3ba   :  { %v494_v3 = vmul.f32 1.442695, %v490_v2  ;;  %vm492_vm5 = vcmp.gt.f32.partialorder %v490_v2, 0.0 }
 0x3bc   :  { %618 = vpow2.f32 %v494_v3 }
 0x3bd   :  { %v485_v4 = vpop.f32.mrf.mxu2 }
 0x3be   :  { %v486_v6 = vadd.f32 %v605_v62, %v485_v4 }
 0x3c0   :  { %v491_v7 = vadd.f32 %v489_v5, %v486_v6 }
 0x3c2   :  { %v619_v8 = vpop.eup %618  ;;  %v496_v9 = vmul.f32 1.442695, %v491_v7  ;;  %vm493_vm6 = vcmp.gt.f32.partialorder %v491_v7, 0.0 }
 0x3c3   :  { %v551_v10 = vadd.f32 -1.0, %v619_v8 }
 0x3c4   :  { %620 = vpow2.f32 %v496_v9 }
 0x3c5   :  { %v500_v11 = vmul.f32 1.6732632, %v551_v10 }
 0x3c7   :  { %v502_v12 = vsel %vm492_vm5, %v490_v2, %v500_v11 }
 0x3c8   :  { %v504_v13 = vmul.f32 1.050701, %v502_v12 }
 0x3ca   :  { %v621_v14 = vpop.eup %620  ;;  %506 = vst [vmem:[%s817_s11] sm:$0xff] %v504_v13 }
 0x3cb   :  { %v552_v15 = vadd.f32 -1.0, %v621_v14 }
 0x3cd   :  { %v501_v16 = vmul.f32 1.6732632, %v552_v15 }
 0x3cf   :  { %v503_v17 = vsel %vm493_vm6, %v491_v7, %v501_v16 }
 0x3d0   :  { %v505_v18 = vmul.f32 1.050701, %v503_v17 }
 0x3d2   :  { %507 = vst [vmem:[%s817_s11 + $0x8] sm:$0xff] %v505_v18 }

</bundles_post_ra>
